<compile_context>
chip_gen: v7x
topology: tpu7x:2x2x1
jax: 0.10.0
libtpu: 0.0.40
codegen_flags: <defaults>
</compile_context>

<pallas_src>
import numpy as np

import jax
import jax.numpy as jnp
from jax.experimental import pallas as pl
from jax.experimental.pallas import tpu as pltpu

EPS = 1e-5
NEG_SLOPE = 0.2
KH = 4          # conv kernel size
STRIDE = 2
HEAD_PAD = 128  # lane-dense width for the fused (real | obj) head


def _conv_out(s):
    return (s - KH) // STRIDE + 1


def _pad8(v):
    return ((v + 7) // 8) * 8


def _pad128(v):
    return ((v + 127) // 128) * 128


# ------------------------------ fused kernel -------------------------------- #

def _make_kernel(bn_cfgs, last_cfg, n_batch):
    """cfg = (src_stride, ho, ho8, wo, cout, wp_in, wp_out); all entries static."""
    num_bn = len(bn_cfgs)

    def kernel(*refs):
        x_ref = refs[0]
        pos = 1
        bn_params = []
        for _ in range(num_bn):
            bn_params.append(tuple(refs[pos:pos + 3]))   # (B_all, gamma_b, beta_b)
            pos += 3
        bl_ref, bias_row_ref = refs[pos], refs[pos + 1]
        pos += 2
        w1_ref, b1_ref, wro_ref, bro_ref = refs[pos:pos + 4]
        pos += 4
        feat_ref, score_ref = refs[pos], refs[pos + 1]
        pos += 2
        act_refs = refs[pos:pos + num_bn]                # VMEM scratch activations

        def gather_patches(src_ref, cfg):
            """[N*ho8, 4*wp_in] bf16 patch matrix: the 4 stride-2 row bands per sample
               (strided pl.ds reads) K-concatenated along lanes; per-sample rows padded
               to ho8 with zero rows (kept out of the BN stats via true inv_cnt)."""
            src_stride, ho, ho8, _wo, _cout, wp_in, _wp_out = cfg
            blocks = []
            for n in range(n_batch):
                base = n * src_stride
                bands = [src_ref[pl.ds(base + di, ho, stride=STRIDE), :]
                         for di in range(KH)]
                rows = jnp.concatenate(bands, axis=1)           # [ho, 4*wp_in] f32
                if ho8 > ho:
                    rows = jnp.concatenate(
                        [rows, jnp.zeros((ho8 - ho, KH * wp_in), rows.dtype)], axis=0)
                blocks.append(rows)
            return jnp.concatenate(blocks, axis=0).astype(jnp.bfloat16)

        def group_reduce(v, cout):
            """Wrap-around roll reduction along lanes: every lane ends up holding the
               sum over all (wp // cout) spatial groups of its channel (lane % cout).
               Fold + broadcast-back in one shot on the XLU (group count is a power
               of two by construction)."""
            wp = v.shape[-1]
            shift = cout
            while shift < wp:
                v = v + pltpu.roll(v, shift=shift, axis=1)
                shift *= 2
            return v

        # ---- Conv -> BatchNorm(batch stats, biased var) -> LeakyReLU(0.2) ----
        src_ref = x_ref
        for li in range(num_bn):
            cfg = bn_cfgs[li]
            _src_stride, ho, _ho8, wo, cout, _wp_in, _wp_out = cfg
            b_ref, g_ref, be_ref = bn_params[li]

            patches = gather_patches(src_ref, cfg)              # [N*ho8, 512] bf16
            acc = jnp.dot(patches, b_ref[...],
                          preferred_element_type=jnp.float32)   # [N*ho8, 128] f32
            # padded rows / padded lane groups of `acc` are exactly zero.

            stats = jnp.concatenate(
                [jnp.sum(acc, axis=0, keepdims=True),
                 jnp.sum(acc * acc, axis=0, keepdims=True)], axis=0)   # [2, 128]
            stats = group_reduce(stats, cout)
            inv_cnt = 1.0 / float(n_batch * ho * wo)            # true element count
            mean = stats[0:1] * inv_cnt
            var = jnp.maximum(stats[1:2] * inv_cnt - mean * mean, 0.0)

            scale = g_ref[...] * jax.lax.rsqrt(var + EPS)       # gamma_b == 0 on pads
            shift_v = be_ref[...] - mean * scale                # beta_b  == 0 on pads
            y = acc * scale + shift_v
            y = jnp.where(y > 0, y, NEG_SLOPE * y)              # LeakyReLU(0.2)
            act_refs[li][...] = y
            src_ref = act_refs[li]

        # ---- last conv (bias, no norm) + global average pool ----
        _src_stride, ho, ho8, wo, cout, _wp_in, _wp_out = last_cfg
        patches = gather_patches(src_ref, last_cfg)
        acc = jnp.dot(patches, bl_ref[...], preferred_element_type=jnp.float32)
        colsums = jnp.concatenate(
            [jnp.sum(acc[n * ho8:n * ho8 + ho], axis=0, keepdims=True)
             for n in range(n_batch)], axis=0)                  # [N, 128]
        inv_spatial = 1.0 / float(ho * wo)
        pooled = group_reduce(colsums, cout) * inv_spatial + bias_row_ref[...]
        # lanes >= cout hold channel-sum replicas; W1 rows there are zero-padded.

        # ---- Linear(nf, 1024) -> model_out ; fused (real | obj) head ----
        feat = jnp.dot(pooled.astype(jnp.bfloat16), w1_ref[...],
                       preferred_element_type=jnp.float32) + b1_ref[...]
        feat_ref[...] = feat                                    # [N, 1024]
        score_ref[...] = jnp.dot(feat.astype(jnp.bfloat16), wro_ref[...],
                                 preferred_element_type=jnp.float32) + bro_ref[...]

    return kernel


# --------------------------- host-side parameters --------------------------- #

def _banded_weight(w_hwio, wo, cin, cout, wp_in, wp_out):
    """[4*wp_in, wp_out] bf16 block-Toeplitz weight: the k=4, stride-2, valid conv over
       an [H, W*Cin]-folded activation becomes ONE matmul of the K-concatenated
       stride-2 row bands against this matrix.  Padded rows/cols are zero."""
    w_np = np.asarray(w_hwio, np.float32)                       # [4, 4, cin, cout]
    b = np.zeros((KH * wp_in, wp_out), np.float32)
    for di in range(KH):
        for dj in range(KH):
            for j in range(wo):
                wi = STRIDE * j + dj
                r0 = di * wp_in + wi * cin
                b[r0:r0 + cin, j * cout:(j + 1) * cout] = w_np[di, dj]
    return jnp.asarray(b, jnp.bfloat16)


def _tiled_vec(vec, wo, cout, wp_out):
    """Per-channel vector tiled over the real Wo spatial groups of the folded lane
       layout; padded groups stay zero so padded lanes stay exactly zero."""
    v = np.zeros((1, wp_out), np.float32)
    for j in range(wo):
        v[0, j * cout:(j + 1) * cout] = vec
    return jnp.asarray(v)


def _bias_row(bias_vec, cout, wp_out):
    v = np.zeros((1, wp_out), np.float32)
    v[0, :cout] = np.asarray(bias_vec, np.float32)
    return jnp.asarray(v)


def build_discriminator(key, ind, vocab, input_nc, height, width, ndf=8, n_layers=3):
    """Synthetic parameters mirroring NLayerObjDiscriminator.__init__, pre-packed into
       the fused kernel's lane-dense layouts.
       Returns (flat_params, bn_cfgs, last_cfg, num_objects, padded_input_width)."""
    num_objects = len(vocab['object_idx_to_name'])
    assert 1 + num_objects <= HEAD_PAD
    keys = iter(jax.random.split(key, 64))

    def rnd(shape):
        return jax.random.normal(next(keys), shape, jnp.float32) * 0.05

    # channel plan (mirrors the PyTorch __init__)
    chans = [(input_nc, ndf)]
    nf = ndf
    for _ in range(n_layers - ind):
        nf_prev, nf = nf, min(nf * 2, 512)
        chans.append((nf_prev, nf))
    nf_prev, nf = nf, min(nf * 2, 512)
    last_chan = (nf_prev, nf)

    h, w = height, width
    src_stride = h                       # per-sample row stride of the layer's source
    wp_in = _pad128(w * input_nc)
    wp_in0 = wp_in
    bn_cfgs, flat = [], []
    for (cin, cout) in chans:
        ho, wo = _conv_out(h), _conv_out(w)
        ho8, wp_out = _pad8(ho), _pad128(wo * cout)
        groups = wp_out // cout
        assert wp_out % cout == 0 and (groups & (groups - 1)) == 0, \
            "roll reduction needs a power-of-two group count"
        bn_cfgs.append((src_stride, ho, ho8, wo, cout, wp_in, wp_out))
        w_conv = rnd((KH, KH, cin, cout))
        # NOTE: conv bias before BatchNorm is exactly cancelled by the batch-mean
        # subtraction (training-mode BN), so it is dropped.
        flat += [_banded_weight(w_conv, wo, cin, cout, wp_in, wp_out),
                 _tiled_vec(np.ones((cout,), np.float32), wo, cout, wp_out),   # gamma
                 _tiled_vec(np.zeros((cout,), np.float32), wo, cout, wp_out)]  # beta
        h, w = ho, wo
        src_stride, wp_in = ho8, wp_out

    cin, cout = last_chan
    ho, wo = _conv_out(h), _conv_out(w)
    ho8, wp_out = _pad8(ho), _pad128(wo * cout)
    groups = wp_out // cout
    assert wp_out % cout == 0 and (groups & (groups - 1)) == 0
    last_cfg = (src_stride, ho, ho8, wo, cout, wp_in, wp_out)
    w_conv = rnd((KH, KH, cin, cout))
    bias_last = rnd((cout,))
    flat += [_banded_weight(w_conv, wo, cin, cout, wp_in, wp_out),
             _bias_row(bias_last, cout, wp_out)]                # last conv bias (kept)

    # head: Linear(nf,1024); class_real (1024->1) and class_obj (1024->num_objects)
    w1 = rnd((cout, 1024))
    w1_pad = jnp.zeros((wp_out, 1024), jnp.float32).at[:cout, :].set(w1)
    b1 = rnd((1, 1024))
    wr, br = rnd((1024, 1)), rnd((1, 1))
    wobj, bobj = rnd((1024, num_objects)), rnd((1, num_objects))
    wro = jnp.zeros((1024, HEAD_PAD), jnp.float32)
    wro = wro.at[:, 0:1].set(wr).at[:, 1:1 + num_objects].set(wobj)
    bro = jnp.zeros((1, HEAD_PAD), jnp.float32)
    bro = bro.at[:, 0:1].set(br).at[:, 1:1 + num_objects].set(bobj)
    flat += [w1_pad.astype(jnp.bfloat16), b1, wro.astype(jnp.bfloat16), bro]

    return tuple(flat), bn_cfgs, last_cfg, num_objects, wp_in0


# ------------------------------- forward ------------------------------------ #

def make_forward(bn_cfgs, last_cfg, n_batch, num_objects):
    kernel = _make_kernel(bn_cfgs, last_cfg, n_batch)
    scratch = [pltpu.VMEM((n_batch * cfg[2], cfg[6]), jnp.float32) for cfg in bn_cfgs]
    call = pl.pallas_call(
        kernel,
        out_shape=(jax.ShapeDtypeStruct((n_batch, 1024), jnp.float32),
                   jax.ShapeDtypeStruct((n_batch, HEAD_PAD), jnp.float32)),
        scratch_shapes=scratch,
    )

    def fwd(x_rows, flat_params):
        model_out, scores = call(x_rows, *flat_params)
        real_score = scores[:, 0:1]
        obj_score = scores[:, 1:1 + num_objects]
        return model_out, real_score, obj_score

    return jax.jit(fwd)


# --------------------------------- main -------------------------------------- #

if __name__ == "__main__":
    # Module configuration (small, consistent with the PyTorch __init__):
    ind = 2
    n_layers = 3
    input_nc = 4
    ndf = 8
    height = width = 32   # three k=4,s=2,p=0 convs need >= 22x22 spatial input
    batch = 2
    vocab = {'object_idx_to_name': ['__image__', 'person', 'car', 'dog',
                                    'cat', 'tree', 'sky', 'road']}

    key = jax.random.PRNGKey(0)
    kx, kp = jax.random.split(key)

    flat_params, bn_cfgs, last_cfg, num_objects, wp_in0 = build_discriminator(
        kp, ind, vocab, input_nc, height, width, ndf=ndf, n_layers=n_layers)

    # PyTorch-convention NCHW input; folded once at the boundary to [N*H, W*C]
    # (lane-padded to a multiple of 128 if needed).
    x_nchw = jax.random.normal(kx, (batch, input_nc, height, width), jnp.float32)
    x_rows = jnp.transpose(x_nchw, (0, 2, 3, 1)).reshape(batch * height,
                                                         width * input_nc)
    if wp_in0 > width * input_nc:
        x_rows = jnp.pad(x_rows, ((0, 0), (0, wp_in0 - width * input_nc)))

    forward = make_forward(bn_cfgs, last_cfg, n_batch=batch, num_objects=num_objects)
    model_out, real_score, obj_score = forward(x_rows, flat_params)
    jax.block_until_ready((model_out, real_score, obj_score))

    assert model_out.shape == (batch, 1024)
    assert real_score.shape == (batch, 1)
    assert obj_score.shape == (batch, num_objects)
    print("KERNEL_OK")
</pallas_src>

<mosaic_0001>
module attributes {stable_mosaic.version = 11 : i64} {
  func.func @kernel(%arg0: memref<64x128xf32, #tpu.memory_space<vmem>>, %arg1: memref<512x128xbf16, #tpu.memory_space<vmem>>, %arg2: memref<1x128xf32, #tpu.memory_space<vmem>>, %arg3: memref<1x128xf32, #tpu.memory_space<vmem>>, %arg4: memref<512x128xbf16, #tpu.memory_space<vmem>>, %arg5: memref<1x128xf32, #tpu.memory_space<vmem>>, %arg6: memref<1x128xf32, #tpu.memory_space<vmem>>, %arg7: memref<512x128xbf16, #tpu.memory_space<vmem>>, %arg8: memref<1x128xf32, #tpu.memory_space<vmem>>, %arg9: memref<128x1024xbf16, #tpu.memory_space<vmem>>, %arg10: memref<1x1024xf32, #tpu.memory_space<vmem>>, %arg11: memref<1024x128xbf16, #tpu.memory_space<vmem>>, %arg12: memref<1x128xf32, #tpu.memory_space<vmem>>, %arg13: memref<2x1024xf32, #tpu.memory_space<vmem>>, %arg14: memref<2x128xf32, #tpu.memory_space<vmem>>, %arg15: memref<32x128xf32, #tpu.memory_space<vmem>>, %arg16: memref<16x128xf32, #tpu.memory_space<vmem>>) attributes {dimension_semantics = [], scalar_prefetch = 0 : i64, scratch_operands = 2 : i64, tpu.core_type = #tpu.core_type<tc>} {
    %c0 = arith.constant 0 : index
    %c0_0 = arith.constant 0 : index
    %0 = tpu.strided_load %arg0[%c0, %c0_0] {strides = array<i32: 2, 1>} : memref<64x128xf32, #tpu.memory_space<vmem>>, vector<15x128xf32>
    %c1 = arith.constant 1 : index
    %c0_1 = arith.constant 0 : index
    %1 = tpu.strided_load %arg0[%c1, %c0_1] {strides = array<i32: 2, 1>} : memref<64x128xf32, #tpu.memory_space<vmem>>, vector<15x128xf32>
    %c2 = arith.constant 2 : index
    %c0_2 = arith.constant 0 : index
    %2 = tpu.strided_load %arg0[%c2, %c0_2] {strides = array<i32: 2, 1>} : memref<64x128xf32, #tpu.memory_space<vmem>>, vector<15x128xf32>
    %c3 = arith.constant 3 : index
    %c0_3 = arith.constant 0 : index
    %3 = tpu.strided_load %arg0[%c3, %c0_3] {strides = array<i32: 2, 1>} : memref<64x128xf32, #tpu.memory_space<vmem>>, vector<15x128xf32>
    %4 = tpu.concatenate %0, %1, %2, %3 in 1 : vector<15x128xf32>, vector<15x128xf32>, vector<15x128xf32>, vector<15x128xf32> -> vector<15x512xf32>
    %cst = arith.constant 0.000000e+00 : f32
    %5 = vector.broadcast %cst : f32 to vector<1x512xf32>
    %6 = tpu.concatenate %4, %5 in 0 : vector<15x512xf32>, vector<1x512xf32> -> vector<16x512xf32>
    %c32 = arith.constant 32 : index
    %c0_4 = arith.constant 0 : index
    %7 = tpu.strided_load %arg0[%c32, %c0_4] {strides = array<i32: 2, 1>} : memref<64x128xf32, #tpu.memory_space<vmem>>, vector<15x128xf32>
    %c33 = arith.constant 33 : index
    %c0_5 = arith.constant 0 : index
    %8 = tpu.strided_load %arg0[%c33, %c0_5] {strides = array<i32: 2, 1>} : memref<64x128xf32, #tpu.memory_space<vmem>>, vector<15x128xf32>
    %c34 = arith.constant 34 : index
    %c0_6 = arith.constant 0 : index
    %9 = tpu.strided_load %arg0[%c34, %c0_6] {strides = array<i32: 2, 1>} : memref<64x128xf32, #tpu.memory_space<vmem>>, vector<15x128xf32>
    %c35 = arith.constant 35 : index
    %c0_7 = arith.constant 0 : index
    %10 = tpu.strided_load %arg0[%c35, %c0_7] {strides = array<i32: 2, 1>} : memref<64x128xf32, #tpu.memory_space<vmem>>, vector<15x128xf32>
    %11 = tpu.concatenate %7, %8, %9, %10 in 1 : vector<15x128xf32>, vector<15x128xf32>, vector<15x128xf32>, vector<15x128xf32> -> vector<15x512xf32>
    %cst_8 = arith.constant 0.000000e+00 : f32
    %12 = vector.broadcast %cst_8 : f32 to vector<1x512xf32>
    %13 = tpu.concatenate %11, %12 in 0 : vector<15x512xf32>, vector<1x512xf32> -> vector<16x512xf32>
    %14 = tpu.concatenate %6, %13 in 0 : vector<16x512xf32>, vector<16x512xf32> -> vector<32x512xf32>
    %15 = arith.truncf %14 : vector<32x512xf32> to vector<32x512xbf16>
    %c0_9 = arith.constant 0 : index
    %c0_10 = arith.constant 0 : index
    %16 = vector.load %arg1[%c0_9, %c0_10] : memref<512x128xbf16, #tpu.memory_space<vmem>>, vector<512x128xbf16>
    %cst_11 = arith.constant dense<0.000000e+00> : vector<32x128xf32>
    %17 = tpu.matmul %15, %16, %cst_11 {dimension_numbers = #tpu.dot_dimension_numbers<[1], [0], [0], [1], [0, 0, 1, 1], [], []>} : vector<32x512xbf16>, vector<512x128xbf16>, vector<32x128xf32> -> vector<32x128xf32>
    %cst_12 = arith.constant dense<0.000000e+00> : vector<128xf32>
    %18 = vector.multi_reduction <add>, %17, %cst_12 [0] : vector<32x128xf32> to vector<128xf32>
    %19 = vector.shape_cast %18 : vector<128xf32> to vector<1x128xf32>
    %20 = arith.mulf %17, %17 : vector<32x128xf32>
    %cst_13 = arith.constant dense<0.000000e+00> : vector<128xf32>
    %21 = vector.multi_reduction <add>, %20, %cst_13 [0] : vector<32x128xf32> to vector<128xf32>
    %22 = vector.shape_cast %21 : vector<128xf32> to vector<1x128xf32>
    %23 = tpu.concatenate %19, %22 in 0 : vector<1x128xf32>, vector<1x128xf32> -> vector<2x128xf32>
    %c8_i32 = arith.constant 8 : i32
    %24 = tpu.dynamic_rotate %23 by %c8_i32 dim 1 : vector<2x128xf32>, i32 -> vector<2x128xf32>
    %25 = arith.addf %23, %24 : vector<2x128xf32>
    %c16_i32 = arith.constant 16 : i32
    %26 = tpu.dynamic_rotate %25 by %c16_i32 dim 1 : vector<2x128xf32>, i32 -> vector<2x128xf32>
    %27 = arith.addf %25, %26 : vector<2x128xf32>
    %c32_i32 = arith.constant 32 : i32
    %28 = tpu.dynamic_rotate %27 by %c32_i32 dim 1 : vector<2x128xf32>, i32 -> vector<2x128xf32>
    %29 = arith.addf %27, %28 : vector<2x128xf32>
    %c64_i32 = arith.constant 64 : i32
    %30 = tpu.dynamic_rotate %29 by %c64_i32 dim 1 : vector<2x128xf32>, i32 -> vector<2x128xf32>
    %31 = arith.addf %29, %30 : vector<2x128xf32>
    %32 = vector.extract_strided_slice %31 {offsets = [0, 0], sizes = [1, 128], strides = [1, 1]} : vector<2x128xf32> to vector<1x128xf32>
    %cst_14 = arith.constant 0.00222222228 : f32
    %33 = vector.broadcast %cst_14 : f32 to vector<1x128xf32>
    %34 = arith.mulf %32, %33 : vector<1x128xf32>
    %35 = vector.extract_strided_slice %31 {offsets = [1, 0], sizes = [1, 128], strides = [1, 1]} : vector<2x128xf32> to vector<1x128xf32>
    %cst_15 = arith.constant 0.00222222228 : f32
    %36 = vector.broadcast %cst_15 : f32 to vector<1x128xf32>
    %37 = arith.mulf %35, %36 : vector<1x128xf32>
    %38 = arith.mulf %34, %34 : vector<1x128xf32>
    %39 = arith.subf %37, %38 : vector<1x128xf32>
    %cst_16 = arith.constant 0.000000e+00 : f32
    %40 = vector.broadcast %cst_16 : f32 to vector<1x128xf32>
    %41 = arith.maximumf %39, %40 : vector<1x128xf32>
    %c0_17 = arith.constant 0 : index
    %c0_18 = arith.constant 0 : index
    %42 = vector.load %arg2[%c0_17, %c0_18] : memref<1x128xf32, #tpu.memory_space<vmem>>, vector<1x128xf32>
    %cst_19 = arith.constant 9.99999974E-6 : f32
    %43 = vector.broadcast %cst_19 : f32 to vector<1x128xf32>
    %44 = arith.addf %41, %43 : vector<1x128xf32>
    %45 = math.rsqrt %44 : vector<1x128xf32>
    %46 = arith.mulf %42, %45 : vector<1x128xf32>
    %c0_20 = arith.constant 0 : index
    %c0_21 = arith.constant 0 : index
    %47 = vector.load %arg3[%c0_20, %c0_21] : memref<1x128xf32, #tpu.memory_space<vmem>>, vector<1x128xf32>
    %48 = arith.mulf %34, %46 : vector<1x128xf32>
    %49 = arith.subf %47, %48 : vector<1x128xf32>
    %50 = vector.broadcast %46 : vector<1x128xf32> to vector<32x128xf32>
    %51 = arith.mulf %17, %50 : vector<32x128xf32>
    %52 = vector.broadcast %49 : vector<1x128xf32> to vector<32x128xf32>
    %53 = arith.addf %51, %52 : vector<32x128xf32>
    %cst_22 = arith.constant 0.000000e+00 : f32
    %54 = vector.broadcast %cst_22 : f32 to vector<32x128xf32>
    %55 = arith.cmpf ogt, %53, %54 : vector<32x128xf32>
    %cst_23 = arith.constant 2.000000e-01 : f32
    %56 = vector.broadcast %cst_23 : f32 to vector<32x128xf32>
    %57 = arith.mulf %56, %53 : vector<32x128xf32>
    %58 = arith.select %55, %53, %57 : vector<32x128xi1>, vector<32x128xf32>
    %c0_24 = arith.constant 0 : index
    %c0_25 = arith.constant 0 : index
    %59 = vector.load %arg15[%c0_24, %c0_25] : memref<32x128xf32, #tpu.memory_space<vmem>>, vector<32x128xf32>
    tpu.vector_store %arg15[%c0_24, %c0_25], %58 {strides = array<i32>} : memref<32x128xf32, #tpu.memory_space<vmem>>, vector<32x128xf32>,
    %c0_26 = arith.constant 0 : index
    %c0_27 = arith.constant 0 : index
    %60 = tpu.strided_load %arg15[%c0_26, %c0_27] {strides = array<i32: 2, 1>} : memref<32x128xf32, #tpu.memory_space<vmem>>, vector<6x128xf32>
    %c1_28 = arith.constant 1 : index
    %c0_29 = arith.constant 0 : index
    %61 = tpu.strided_load %arg15[%c1_28, %c0_29] {strides = array<i32: 2, 1>} : memref<32x128xf32, #tpu.memory_space<vmem>>, vector<6x128xf32>
    %c2_30 = arith.constant 2 : index
    %c0_31 = arith.constant 0 : index
    %62 = tpu.strided_load %arg15[%c2_30, %c0_31] {strides = array<i32: 2, 1>} : memref<32x128xf32, #tpu.memory_space<vmem>>, vector<6x128xf32>
    %c3_32 = arith.constant 3 : index
    %c0_33 = arith.constant 0 : index
    %63 = tpu.strided_load %arg15[%c3_32, %c0_33] {strides = array<i32: 2, 1>} : memref<32x128xf32, #tpu.memory_space<vmem>>, vector<6x128xf32>
    %64 = tpu.concatenate %60, %61, %62, %63 in 1 : vector<6x128xf32>, vector<6x128xf32>, vector<6x128xf32>, vector<6x128xf32> -> vector<6x512xf32>
    %cst_34 = arith.constant 0.000000e+00 : f32
    %65 = vector.broadcast %cst_34 : f32 to vector<2x512xf32>
    %66 = tpu.concatenate %64, %65 in 0 : vector<6x512xf32>, vector<2x512xf32> -> vector<8x512xf32>
    %c16 = arith.constant 16 : index
    %c0_35 = arith.constant 0 : index
    %67 = tpu.strided_load %arg15[%c16, %c0_35] {strides = array<i32: 2, 1>} : memref<32x128xf32, #tpu.memory_space<vmem>>, vector<6x128xf32>
    %c17 = arith.constant 17 : index
    %c0_36 = arith.constant 0 : index
    %68 = tpu.strided_load %arg15[%c17, %c0_36] {strides = array<i32: 2, 1>} : memref<32x128xf32, #tpu.memory_space<vmem>>, vector<6x128xf32>
    %c18 = arith.constant 18 : index
    %c0_37 = arith.constant 0 : index
    %69 = tpu.strided_load %arg15[%c18, %c0_37] {strides = array<i32: 2, 1>} : memref<32x128xf32, #tpu.memory_space<vmem>>, vector<6x128xf32>
    %c19 = arith.constant 19 : index
    %c0_38 = arith.constant 0 : index
    %70 = tpu.strided_load %arg15[%c19, %c0_38] {strides = array<i32: 2, 1>} : memref<32x128xf32, #tpu.memory_space<vmem>>, vector<6x128xf32>
    %71 = tpu.concatenate %67, %68, %69, %70 in 1 : vector<6x128xf32>, vector<6x128xf32>, vector<6x128xf32>, vector<6x128xf32> -> vector<6x512xf32>
    %cst_39 = arith.constant 0.000000e+00 : f32
    %72 = vector.broadcast %cst_39 : f32 to vector<2x512xf32>
    %73 = tpu.concatenate %71, %72 in 0 : vector<6x512xf32>, vector<2x512xf32> -> vector<8x512xf32>
    %74 = tpu.concatenate %66, %73 in 0 : vector<8x512xf32>, vector<8x512xf32> -> vector<16x512xf32>
    %75 = arith.truncf %74 : vector<16x512xf32> to vector<16x512xbf16>
    %c0_40 = arith.constant 0 : index
    %c0_41 = arith.constant 0 : index
    %76 = vector.load %arg4[%c0_40, %c0_41] : memref<512x128xbf16, #tpu.memory_space<vmem>>, vector<512x128xbf16>
    %cst_42 = arith.constant dense<0.000000e+00> : vector<16x128xf32>
    %77 = tpu.matmul %75, %76, %cst_42 {dimension_numbers = #tpu.dot_dimension_numbers<[1], [0], [0], [1], [0, 0, 1, 1], [], []>} : vector<16x512xbf16>, vector<512x128xbf16>, vector<16x128xf32> -> vector<16x128xf32>
    %cst_43 = arith.constant dense<0.000000e+00> : vector<128xf32>
    %78 = vector.multi_reduction <add>, %77, %cst_43 [0] : vector<16x128xf32> to vector<128xf32>
    %79 = vector.shape_cast %78 : vector<128xf32> to vector<1x128xf32>
    %80 = arith.mulf %77, %77 : vector<16x128xf32>
    %cst_44 = arith.constant dense<0.000000e+00> : vector<128xf32>
    %81 = vector.multi_reduction <add>, %80, %cst_44 [0] : vector<16x128xf32> to vector<128xf32>
    %82 = vector.shape_cast %81 : vector<128xf32> to vector<1x128xf32>
    %83 = tpu.concatenate %79, %82 in 0 : vector<1x128xf32>, vector<1x128xf32> -> vector<2x128xf32>
    %c16_i32_45 = arith.constant 16 : i32
    %84 = tpu.dynamic_rotate %83 by %c16_i32_45 dim 1 : vector<2x128xf32>, i32 -> vector<2x128xf32>
    %85 = arith.addf %83, %84 : vector<2x128xf32>
    %c32_i32_46 = arith.constant 32 : i32
    %86 = tpu.dynamic_rotate %85 by %c32_i32_46 dim 1 : vector<2x128xf32>, i32 -> vector<2x128xf32>
    %87 = arith.addf %85, %86 : vector<2x128xf32>
    %c64_i32_47 = arith.constant 64 : i32
    %88 = tpu.dynamic_rotate %87 by %c64_i32_47 dim 1 : vector<2x128xf32>, i32 -> vector<2x128xf32>
    %89 = arith.addf %87, %88 : vector<2x128xf32>
    %90 = vector.extract_strided_slice %89 {offsets = [0, 0], sizes = [1, 128], strides = [1, 1]} : vector<2x128xf32> to vector<1x128xf32>
    %cst_48 = arith.constant 0.013888889 : f32
    %91 = vector.broadcast %cst_48 : f32 to vector<1x128xf32>
    %92 = arith.mulf %90, %91 : vector<1x128xf32>
    %93 = vector.extract_strided_slice %89 {offsets = [1, 0], sizes = [1, 128], strides = [1, 1]} : vector<2x128xf32> to vector<1x128xf32>
    %cst_49 = arith.constant 0.013888889 : f32
    %94 = vector.broadcast %cst_49 : f32 to vector<1x128xf32>
    %95 = arith.mulf %93, %94 : vector<1x128xf32>
    %96 = arith.mulf %92, %92 : vector<1x128xf32>
    %97 = arith.subf %95, %96 : vector<1x128xf32>
    %cst_50 = arith.constant 0.000000e+00 : f32
    %98 = vector.broadcast %cst_50 : f32 to vector<1x128xf32>
    %99 = arith.maximumf %97, %98 : vector<1x128xf32>
    %c0_51 = arith.constant 0 : index
    %c0_52 = arith.constant 0 : index
    %100 = vector.load %arg5[%c0_51, %c0_52] : memref<1x128xf32, #tpu.memory_space<vmem>>, vector<1x128xf32>
    %cst_53 = arith.constant 9.99999974E-6 : f32
    %101 = vector.broadcast %cst_53 : f32 to vector<1x128xf32>
    %102 = arith.addf %99, %101 : vector<1x128xf32>
    %103 = math.rsqrt %102 : vector<1x128xf32>
    %104 = arith.mulf %100, %103 : vector<1x128xf32>
    %c0_54 = arith.constant 0 : index
    %c0_55 = arith.constant 0 : index
    %105 = vector.load %arg6[%c0_54, %c0_55] : memref<1x128xf32, #tpu.memory_space<vmem>>, vector<1x128xf32>
    %106 = arith.mulf %92, %104 : vector<1x128xf32>
    %107 = arith.subf %105, %106 : vector<1x128xf32>
    %108 = vector.broadcast %104 : vector<1x128xf32> to vector<16x128xf32>
    %109 = arith.mulf %77, %108 : vector<16x128xf32>
    %110 = vector.broadcast %107 : vector<1x128xf32> to vector<16x128xf32>
    %111 = arith.addf %109, %110 : vector<16x128xf32>
    %cst_56 = arith.constant 0.000000e+00 : f32
    %112 = vector.broadcast %cst_56 : f32 to vector<16x128xf32>
    %113 = arith.cmpf ogt, %111, %112 : vector<16x128xf32>
    %cst_57 = arith.constant 2.000000e-01 : f32
    %114 = vector.broadcast %cst_57 : f32 to vector<16x128xf32>
    %115 = arith.mulf %114, %111 : vector<16x128xf32>
    %116 = arith.select %113, %111, %115 : vector<16x128xi1>, vector<16x128xf32>
    %c0_58 = arith.constant 0 : index
    %c0_59 = arith.constant 0 : index
    %117 = vector.load %arg16[%c0_58, %c0_59] : memref<16x128xf32, #tpu.memory_space<vmem>>, vector<16x128xf32>
    tpu.vector_store %arg16[%c0_58, %c0_59], %116 {strides = array<i32>} : memref<16x128xf32, #tpu.memory_space<vmem>>, vector<16x128xf32>,
    %c0_60 = arith.constant 0 : index
    %c0_61 = arith.constant 0 : index
    %118 = tpu.strided_load %arg16[%c0_60, %c0_61] {strides = array<i32: 2, 1>} : memref<16x128xf32, #tpu.memory_space<vmem>>, vector<2x128xf32>
    %c1_62 = arith.constant 1 : index
    %c0_63 = arith.constant 0 : index
    %119 = tpu.strided_load %arg16[%c1_62, %c0_63] {strides = array<i32: 2, 1>} : memref<16x128xf32, #tpu.memory_space<vmem>>, vector<2x128xf32>
    %c2_64 = arith.constant 2 : index
    %c0_65 = arith.constant 0 : index
    %120 = tpu.strided_load %arg16[%c2_64, %c0_65] {strides = array<i32: 2, 1>} : memref<16x128xf32, #tpu.memory_space<vmem>>, vector<2x128xf32>
    %c3_66 = arith.constant 3 : index
    %c0_67 = arith.constant 0 : index
    %121 = tpu.strided_load %arg16[%c3_66, %c0_67] {strides = array<i32: 2, 1>} : memref<16x128xf32, #tpu.memory_space<vmem>>, vector<2x128xf32>
    %122 = tpu.concatenate %118, %119, %120, %121 in 1 : vector<2x128xf32>, vector<2x128xf32>, vector<2x128xf32>, vector<2x128xf32> -> vector<2x512xf32>
    %cst_68 = arith.constant 0.000000e+00 : f32
    %123 = vector.broadcast %cst_68 : f32 to vector<6x512xf32>
    %124 = tpu.concatenate %122, %123 in 0 : vector<2x512xf32>, vector<6x512xf32> -> vector<8x512xf32>
    %c8 = arith.constant 8 : index
    %c0_69 = arith.constant 0 : index
    %125 = tpu.strided_load %arg16[%c8, %c0_69] {strides = array<i32: 2, 1>} : memref<16x128xf32, #tpu.memory_space<vmem>>, vector<2x128xf32>
    %c9 = arith.constant 9 : index
    %c0_70 = arith.constant 0 : index
    %126 = tpu.strided_load %arg16[%c9, %c0_70] {strides = array<i32: 2, 1>} : memref<16x128xf32, #tpu.memory_space<vmem>>, vector<2x128xf32>
    %c10 = arith.constant 10 : index
    %c0_71 = arith.constant 0 : index
    %127 = tpu.strided_load %arg16[%c10, %c0_71] {strides = array<i32: 2, 1>} : memref<16x128xf32, #tpu.memory_space<vmem>>, vector<2x128xf32>
    %c11 = arith.constant 11 : index
    %c0_72 = arith.constant 0 : index
    %128 = tpu.strided_load %arg16[%c11, %c0_72] {strides = array<i32: 2, 1>} : memref<16x128xf32, #tpu.memory_space<vmem>>, vector<2x128xf32>
    %129 = tpu.concatenate %125, %126, %127, %128 in 1 : vector<2x128xf32>, vector<2x128xf32>, vector<2x128xf32>, vector<2x128xf32> -> vector<2x512xf32>
    %cst_73 = arith.constant 0.000000e+00 : f32
    %130 = vector.broadcast %cst_73 : f32 to vector<6x512xf32>
    %131 = tpu.concatenate %129, %130 in 0 : vector<2x512xf32>, vector<6x512xf32> -> vector<8x512xf32>
    %132 = tpu.concatenate %124, %131 in 0 : vector<8x512xf32>, vector<8x512xf32> -> vector<16x512xf32>
    %133 = arith.truncf %132 : vector<16x512xf32> to vector<16x512xbf16>
    %c0_74 = arith.constant 0 : index
    %c0_75 = arith.constant 0 : index
    %134 = vector.load %arg7[%c0_74, %c0_75] : memref<512x128xbf16, #tpu.memory_space<vmem>>, vector<512x128xbf16>
    %cst_76 = arith.constant dense<0.000000e+00> : vector<16x128xf32>
    %135 = tpu.matmul %133, %134, %cst_76 {dimension_numbers = #tpu.dot_dimension_numbers<[1], [0], [0], [1], [0, 0, 1, 1], [], []>} : vector<16x512xbf16>, vector<512x128xbf16>, vector<16x128xf32> -> vector<16x128xf32>
    %136 = vector.extract_strided_slice %135 {offsets = [0, 0], sizes = [2, 128], strides = [1, 1]} : vector<16x128xf32> to vector<2x128xf32>
    %cst_77 = arith.constant dense<0.000000e+00> : vector<128xf32>
    %137 = vector.multi_reduction <add>, %136, %cst_77 [0] : vector<2x128xf32> to vector<128xf32>
    %138 = vector.shape_cast %137 : vector<128xf32> to vector<1x128xf32>
    %139 = vector.extract_strided_slice %135 {offsets = [8, 0], sizes = [2, 128], strides = [1, 1]} : vector<16x128xf32> to vector<2x128xf32>
    %cst_78 = arith.constant dense<0.000000e+00> : vector<128xf32>
    %140 = vector.multi_reduction <add>, %139, %cst_78 [0] : vector<2x128xf32> to vector<128xf32>
    %141 = vector.shape_cast %140 : vector<128xf32> to vector<1x128xf32>
    %142 = tpu.concatenate %138, %141 in 0 : vector<1x128xf32>, vector<1x128xf32> -> vector<2x128xf32>
    %c32_i32_79 = arith.constant 32 : i32
    %143 = tpu.dynamic_rotate %142 by %c32_i32_79 dim 1 : vector<2x128xf32>, i32 -> vector<2x128xf32>
    %144 = arith.addf %142, %143 : vector<2x128xf32>
    %c64_i32_80 = arith.constant 64 : i32
    %145 = tpu.dynamic_rotate %144 by %c64_i32_80 dim 1 : vector<2x128xf32>, i32 -> vector<2x128xf32>
    %146 = arith.addf %144, %145 : vector<2x128xf32>
    %cst_81 = arith.constant 2.500000e-01 : f32
    %147 = vector.broadcast %cst_81 : f32 to vector<2x128xf32>
    %148 = arith.mulf %146, %147 : vector<2x128xf32>
    %c0_82 = arith.constant 0 : index
    %c0_83 = arith.constant 0 : index
    %149 = vector.load %arg8[%c0_82, %c0_83] : memref<1x128xf32, #tpu.memory_space<vmem>>, vector<1x128xf32>
    %150 = vector.broadcast %149 : vector<1x128xf32> to vector<2x128xf32>
    %151 = arith.addf %148, %150 : vector<2x128xf32>
    %152 = arith.truncf %151 : vector<2x128xf32> to vector<2x128xbf16>
    %c0_84 = arith.constant 0 : index
    %c0_85 = arith.constant 0 : index
    %153 = vector.load %arg9[%c0_84, %c0_85] : memref<128x1024xbf16, #tpu.memory_space<vmem>>, vector<128x1024xbf16>
    %cst_86 = arith.constant dense<0.000000e+00> : vector<2x1024xf32>
    %154 = tpu.matmul %152, %153, %cst_86 {dimension_numbers = #tpu.dot_dimension_numbers<[1], [0], [0], [1], [0, 0, 1, 1], [], []>} : vector<2x128xbf16>, vector<128x1024xbf16>, vector<2x1024xf32> -> vector<2x1024xf32>
    %c0_87 = arith.constant 0 : index
    %c0_88 = arith.constant 0 : index
    %155 = vector.load %arg10[%c0_87, %c0_88] : memref<1x1024xf32, #tpu.memory_space<vmem>>, vector<1x1024xf32>
    %156 = vector.broadcast %155 : vector<1x1024xf32> to vector<2x1024xf32>
    %157 = arith.addf %154, %156 : vector<2x1024xf32>
    %c0_89 = arith.constant 0 : index
    %c0_90 = arith.constant 0 : index
    %158 = vector.load %arg13[%c0_89, %c0_90] : memref<2x1024xf32, #tpu.memory_space<vmem>>, vector<2x1024xf32>
    tpu.vector_store %arg13[%c0_89, %c0_90], %157 {strides = array<i32>} : memref<2x1024xf32, #tpu.memory_space<vmem>>, vector<2x1024xf32>,
    %159 = arith.truncf %157 : vector<2x1024xf32> to vector<2x1024xbf16>
    %c0_91 = arith.constant 0 : index
    %c0_92 = arith.constant 0 : index
    %160 = vector.load %arg11[%c0_91, %c0_92] : memref<1024x128xbf16, #tpu.memory_space<vmem>>, vector<1024x128xbf16>
    %cst_93 = arith.constant dense<0.000000e+00> : vector<2x128xf32>
    %161 = tpu.matmul %159, %160, %cst_93 {dimension_numbers = #tpu.dot_dimension_numbers<[1], [0], [0], [1], [0, 0, 1, 1], [], []>} : vector<2x1024xbf16>, vector<1024x128xbf16>, vector<2x128xf32> -> vector<2x128xf32>
    %c0_94 = arith.constant 0 : index
    %c0_95 = arith.constant 0 : index
    %162 = vector.load %arg12[%c0_94, %c0_95] : memref<1x128xf32, #tpu.memory_space<vmem>>, vector<1x128xf32>
    %163 = vector.broadcast %162 : vector<1x128xf32> to vector<2x128xf32>
    %164 = arith.addf %161, %163 : vector<2x128xf32>
    %c0_96 = arith.constant 0 : index
    %c0_97 = arith.constant 0 : index
    %165 = vector.load %arg14[%c0_96, %c0_97] : memref<2x128xf32, #tpu.memory_space<vmem>>, vector<2x128xf32>
    tpu.vector_store %arg14[%c0_96, %c0_97], %164 {strides = array<i32>} : memref<2x128xf32, #tpu.memory_space<vmem>>, vector<2x128xf32>,
    return
  }
}

</mosaic_0001>

<bundles_post_ra>
// kernel: fwd.1
= control target key start
LH: loop header
LB: loop body
LE: loop exit
PB: predicated region body
PF: predicated region fallthrough
CT: control target
= control target key end

     0   :  { %20 = vsyncpa [#allocation5], 0  ;;  %s4023_s0 = inlined_call_operand.hbm [shape: f32[64,128], index: 0, kind: input, shape index: {}]   ;;  %s4024_s1 = inlined_call_operand.hbm [shape: bf16[512,128], index: 1, kind: input, shape index: {}]   ;;  %s4025_s2 = inlined_call_operand.vmem [shape: f32[1,128], index: 2, kind: input, shape index: {}]   ;;  %s4026_s3 = inlined_call_operand.vmem [shape: f32[1,128], index: 3, kind: input, shape index: {}]   ;;  %s4027_s4 = inlined_call_operand.hbm [shape: bf16[512,128], index: 4, kind: input, shape index: {}]   ;;  %s4028_s5 = inlined_call_operand.vmem [shape: f32[1,128], index: 5, kind: input, shape index: {}]   ;;  %s4029_s6 = inlined_call_operand.vmem [shape: f32[1,128], index: 6, kind: input, shape index: {}]   ;;  %s4030_s7 = inlined_call_operand.hbm [shape: bf16[512,128], index: 7, kind: input, shape index: {}]   ;;  %s4031_s8 = inlined_call_operand.vmem [shape: f32[1,128], index: 8, kind: input, shape index: {}]   ;;  %s4032_s9 = inlined_call_operand.hbm [shape: bf16[128,1024], index: 9, kind: input, shape index: {}]   ;;  %s4033_s10 = inlined_call_operand.vmem [shape: f32[1,1024], index: 10, kind: input, shape index: {}]   ;;  %s4034_s11 = inlined_call_operand.hbm [shape: bf16[1024,128], index: 11, kind: input, shape index: {}]   ;;  %s4035_s12 = inlined_call_operand.vmem [shape: f32[1,128], index: 12, kind: input, shape index: {}]   ;;  %s4036_s13 = inlined_call_operand.hbm [shape: f32[2,1024], index: 13, kind: output, shape index: {0}]   ;;  %s4037_s14 = inlined_call_operand.vmem [shape: f32[2,128], index: 14, kind: output, shape index: {1}]  }
   0x1   :  { %21 = vsyncpa [#allocation8], 0 }
   0x2   :  { %22 = vsyncpa [#allocation11], 0 }
   0x3   :  { %23 = vsyncpa [#allocation14], 0 }
   0x4   :  { %24 = vsyncpa [#allocation6], 0  ;;  %s3677_s29 = smov [#allocation7]   ;;  %s3513_s17 = scalar_lea.hbm %s4024_s1, 4096 }
   0x5   :  { %s42_s30 = sshll.u32 %s3677_s29, 4  ;;  %p3514_p0 = scmp.ne.s32.totalorder %s4024_s1, %s3513_s17  ;;  %s43_s30 = int_to_ptr.vmem [resolvable:$true] %s42_s30 }
   0x6   :  { %p3517_p1 = scmp.lt.u32.totalorder %s3513_s17, %s4024_s1 }
   0x8   :  { %p3519_p2 = pnand %p3517_p1, %p3514_p0 }
   0xa   :  { %3522 = shalt.err (!%p3519_p2)
}
   0xb   :  { %s3523_s22 = scalar_lea.vmem %s43_s30, 4096  ;;  %p3528_p4 = scmp.lt.s32.totalorder %s43_s30, %s43_s30 }
   0xc   :  { %p3524_p3 = scmp.ne.s32.totalorder %s43_s30, %s3523_s22  ;;  %p3529_p5 = scmp.lt.s32.totalorder %s3523_s22, %s3523_s22 }
   0xe   :  { %p3530_p6 = por %p3529_p5, %p3528_p4 }
  0x10   :  { %p3531_p7 = pnand %p3530_p6, %p3524_p3 }
  0x12   :  { %3534 = shalt.err (!%p3531_p7)
}
  0x13   :  { %s3678_s23 = smov 64   ;;  %s3679_s24 = smov 4  }
  0x14   :  { %48 = dma.hbm_to_vmem [thread:$0]  %s4024_s1, 4096, %s43_s30, [#allocation8], %s3678_s23, %s3678_s23, %s3679_s24  }
  0x15   :  { %s3680_s27 = smov [#allocation10]   ;;  %s3681_s29 = smov [#allocation4]  }
  0x16   :  { %s74_s28 = sshll.u32 %s3680_s27, 4  ;;  %s30_s15 = sshll.u32 %s3681_s29, 4  ;;  %s75_s28 = int_to_ptr.vmem [resolvable:$true] %s74_s28  ;;  %s31_s15 = int_to_ptr.vmem [resolvable:$true] %s30_s15 }
  0x17   :  { %s3535_s18 = scalar_lea.hbm %s4030_s7, 4096 }
  0x18   :  { %p3536_p8 = scmp.ne.s32.totalorder %s4030_s7, %s3535_s18  ;;  %p3539_p9 = scmp.lt.u32.totalorder %s3535_s18, %s4030_s7 }
  0x1a   :  { %p3541_p10 = pnand %p3539_p9, %p3536_p8 }
  0x1c   :  { %3544 = shalt.err (!%p3541_p10)
}
  0x1d   :  { %s3545_s1 = scalar_lea.vmem %s75_s28, 4096  ;;  %p3550_p12 = scmp.lt.s32.totalorder %s75_s28, %s75_s28 }
  0x1e   :  { %p3546_p11 = scmp.ne.s32.totalorder %s75_s28, %s3545_s1  ;;  %p3551_p13 = scmp.lt.s32.totalorder %s3545_s1, %s3545_s1 }
  0x20   :  { %p3552_p0 = por %p3551_p13, %p3550_p12 }
  0x22   :  { %p3553_p1 = pnand %p3552_p0, %p3546_p11 }
  0x24   :  { %3556 = shalt.err (!%p3553_p1)
}
  0x25   :  { %80 = dma.hbm_to_vmem [thread:$0]  %s4030_s7, 4096, %s75_s28, [#allocation11], %s3678_s23, %s3678_s23, %s3679_s24  }
  0x26   :  { %s3557_s29 = scalar_lea.hbm %s4023_s0, 1024 }
  0x27   :  { %p3558_p2 = scmp.ne.s32.totalorder %s4023_s0, %s3557_s29  ;;  %p3561_p3 = scmp.lt.u32.totalorder %s3557_s29, %s4023_s0 }
  0x29   :  { %p3563_p4 = pnand %p3561_p3, %p3558_p2 }
  0x2b   :  { %3566 = shalt.err (!%p3563_p4)
}
  0x2c   :  { %s3567_s20 = scalar_lea.vmem %s31_s15, 1024  ;;  %p3572_p6 = scmp.lt.s32.totalorder %s31_s15, %s31_s15 }
  0x2d   :  { %p3568_p5 = scmp.ne.s32.totalorder %s31_s15, %s3567_s20  ;;  %p3573_p7 = scmp.lt.s32.totalorder %s3567_s20, %s3567_s20 }
  0x2f   :  { %p3574_p8 = por %p3573_p7, %p3572_p6 }
  0x31   :  { %p3575_p9 = pnand %p3574_p8, %p3568_p5 }
  0x33   :  { %3578 = shalt.err (!%p3575_p9)
}
  0x34   :  { %s3682_s7 = smov 128   ;;  %s3683_s28 = smov 8  }
  0x35   :  { %36 = dma.hbm_to_vmem [thread:$0]  %s4023_s0, 1024, %s31_s15, [#allocation5], %s3682_s7, %s3682_s7, %s3683_s28  }
  0x36   :  { %s3684_s1 = smov [#allocation9]   ;;  %s3685_s25 = smov [#allocation12]  }
  0x37   :  { %s58_s30 = sshll.u32 %s3684_s1, 4  ;;  %s88_s26 = sshll.u32 %s3685_s25, 4  ;;  %s59_s30 = int_to_ptr.vmem [resolvable:$true] %s58_s30  ;;  %s89_s26 = int_to_ptr.vmem [resolvable:$true] %s88_s26 }
  0x38   :  { %s3579_s16 = scalar_lea.hbm %s4027_s4, 4096 }
  0x39   :  { %p3580_p10 = scmp.ne.s32.totalorder %s4027_s4, %s3579_s16  ;;  %p3583_p11 = scmp.lt.u32.totalorder %s3579_s16, %s4027_s4 }
  0x3b   :  { %p3585_p12 = pnand %p3583_p11, %p3580_p10 }
  0x3d   :  { %3588 = shalt.err (!%p3585_p12)
}
  0x3e   :  { %s3589_s0 = scalar_lea.vmem %s59_s30, 4096  ;;  %p3594_p0 = scmp.lt.s32.totalorder %s59_s30, %s59_s30 }
  0x3f   :  { %p3590_p13 = scmp.ne.s32.totalorder %s59_s30, %s3589_s0  ;;  %p3595_p1 = scmp.lt.s32.totalorder %s3589_s0, %s3589_s0 }
  0x41   :  { %p3596_p2 = por %p3595_p1, %p3594_p0 }
  0x43   :  { %p3597_p3 = pnand %p3596_p2, %p3590_p13 }
  0x45   :  { %3600 = shalt.err (!%p3597_p3)
}
  0x46   :  { %64 = dma.hbm_to_vmem [thread:$0]  %s4027_s4, 4096, %s59_s30, [#allocation8], %s3678_s23, %s3678_s23, %s3679_s24  }
  0x47   :  { %s3601_s1 = scalar_lea.hbm %s4032_s9, 8192 }
  0x48   :  { %p3602_p4 = scmp.ne.s32.totalorder %s4032_s9, %s3601_s1  ;;  %p3605_p5 = scmp.lt.u32.totalorder %s3601_s1, %s4032_s9 }
  0x4a   :  { %p3607_p6 = pnand %p3605_p5, %p3602_p4 }
  0x4c   :  { %3610 = shalt.err (!%p3607_p6)
}
  0x4d   :  { %s3611_s17 = scalar_lea.vmem %s89_s26, 8192  ;;  %p3616_p8 = scmp.lt.s32.totalorder %s89_s26, %s89_s26 }
  0x4e   :  { %p3612_p7 = scmp.ne.s32.totalorder %s89_s26, %s3611_s17  ;;  %p3617_p9 = scmp.lt.s32.totalorder %s3611_s17, %s3611_s17 }
  0x50   :  { %p3618_p10 = por %p3617_p9, %p3616_p8 }
  0x52   :  { %p3619_p11 = pnand %p3618_p10, %p3612_p7 }
  0x54   :  { %3622 = shalt.err (!%p3619_p11)
}
  0x55   :  { %s3686_s4 = smov 512   ;;  %s3687_s30 = smov 32  }
  0x56   :  { %94 = dma.hbm_to_vmem [thread:$0]  %s4032_s9, 8192, %s89_s26, [#allocation11], %s3686_s4, %s3686_s4, %s3687_s30  }
  0x57   :  { %s3688_s20 = smov [#allocation13]   ;;  %s3623_s21 = scalar_lea.hbm %s4034_s11, 8192 }
  0x58   :  { %s102_s0 = sshll.u32 %s3688_s20, 4  ;;  %p3624_p12 = scmp.ne.s32.totalorder %s4034_s11, %s3623_s21  ;;  %s103_s0 = int_to_ptr.vmem [resolvable:$true] %s102_s0 }
  0x59   :  { %p3627_p13 = scmp.lt.u32.totalorder %s3623_s21, %s4034_s11 }
  0x5b   :  { %p3629_p0 = pnand %p3627_p13, %p3624_p12 }
  0x5d   :  { %3632 = shalt.err (!%p3629_p0)
}
  0x5e   :  { %s3633_s29 = scalar_lea.vmem %s103_s0, 8192  ;;  %p3638_p2 = scmp.lt.s32.totalorder %s103_s0, %s103_s0 }
  0x5f   :  { %p3634_p1 = scmp.ne.s32.totalorder %s103_s0, %s3633_s29  ;;  %p3639_p3 = scmp.lt.s32.totalorder %s3633_s29, %s3633_s29 }
  0x61   :  { %p3640_p4 = por %p3639_p3, %p3638_p2 }
  0x63   :  { %p3641_p5 = pnand %p3640_p4, %p3634_p1 }
  0x65   :  { %3644 = shalt.err (!%p3641_p5)
}
  0x66   :  { %108 = dma.hbm_to_vmem [thread:$0]  %s4034_s11, 8192, %s103_s0, [#allocation14], %s3678_s23, %s3678_s23, %s3679_s24  }
  0x67   :  { %3667 = dma.done.wait [#allocation5], 1024  }
  0x68   :  { %3668 = vsyncadd [#allocation5], 4294966272 }
  0x69   :  { %3669 = dma.done.wait [#allocation8], 8192  }
  0x6a   :  { %3670 = vsyncadd [#allocation8], 4294959104 }
  0x6b   :  { %3671 = dma.done.wait [#allocation11], 12288  }
  0x6c   :  { %3672 = vsyncadd [#allocation11], 4294955008 }
  0x6d   :  { %3673 = dma.done.wait [#allocation14], 8192  }
  0x6e   :  { %3674 = vsyncadd [#allocation14], 4294959104  ;;  %v3349_v0 = vld [vmem:[#allocation7 + $0x40] sm:$0xff]   ;;  %v3353_v4 = vld [vmem:[#allocation7 + $0x48] sm:$0xff]   ;;  %vm145_vm0 = vcmask 1046528   ;;  %vm3689_vm1 = vmmov 1  }
  0x6f   :  { %v3350_v1 = vld [vmem:[#allocation7 + $0xc0] sm:$0xff]   ;;  %3099 = vmatprep.subr.bf16.mxu0 %v3349_v0  ;;  %v3354_v5 = vld [vmem:[#allocation7 + $0xc8] sm:$0xff]   ;;  %v3357_v8 = vld [vmem:[#allocation7 + $0x50] sm:$0xff]   ;;  %vm554_vm3 = vcmask 1040384   ;;  %s3690_s11 = smov 16   ;;  %vm642_vm8 = vcmask 1045504  }
  0x70   :  { %v3351_v2 = vld [vmem:[#allocation7] sm:$0xff]   ;;  %3127 = vmatprep.subr.bf16.mxu1 %v3350_v1  ;;  %v3355_v6 = vld [vmem:[#allocation7 + $0x8] sm:$0xff]   ;;  %v3358_v9 = vld [vmem:[#allocation7 + $0xd0] sm:$0xff]   ;;  %vm1089_vm12 = vcmask 1041408  }
  0x71   :  { %v3352_v3 = vld [vmem:[#allocation7 + $0x80] sm:$0xff]   ;;  %3100 = vmatpush3.bf16.msra.mxu0 %v3351_v2  ;;  %v3356_v7 = vld [vmem:[#allocation7 + $0x88] sm:$0xff]   ;;  %v3359_v10 = vld [vmem:[#allocation7 + $0x10] sm:$0xff]  }
  0x72   :  { %3128 = vmatpush3.bf16.msra.mxu1 %v3352_v3  ;;  %3101 = vmatprep.subr.bf16.mxu0 %v3353_v4  ;;  %v3360_v11 = vld [vmem:[#allocation7 + $0x90] sm:$0xff]   ;;  %v3361_v12 = vld [vmem:[#allocation7 + $0x58] sm:$0xff]   ;;  %v3365_v16 = vld [vmem:[#allocation7 + $0x60] sm:$0xff]  }
  0x73   :  { %3129 = vmatprep.subr.bf16.mxu1 %v3354_v5  ;;  %v3362_v13 = vld [vmem:[#allocation7 + $0xd8] sm:$0xff]   ;;  %v3366_v17 = vld [vmem:[#allocation7 + $0xe0] sm:$0xff]   ;;  %v3369_v20 = vld [vmem:[#allocation7 + $0x68] sm:$0xff]  }
  0x74   :  { %v3363_v14 = vld [vmem:[#allocation7 + $0x18] sm:$0xff]   ;;  %v3367_v18 = vld [vmem:[#allocation7 + $0x20] sm:$0xff]   ;;  %v3370_v21 = vld [vmem:[#allocation7 + $0xe8] sm:$0xff]  }
  0x75   :  { %3102 = vmatpush3.bf16.msra.mxu0 %v3355_v6  ;;  %v3364_v15 = vld [vmem:[#allocation7 + $0x98] sm:$0xff]   ;;  %v3368_v19 = vld [vmem:[#allocation7 + $0xa0] sm:$0xff]   ;;  %v3371_v22 = vld [vmem:[#allocation7 + $0x28] sm:$0xff]  }
  0x76   :  { %3130 = vmatpush3.bf16.msra.mxu1 %v3356_v7  ;;  %3103 = vmatprep.subr.bf16.mxu0 %v3357_v8  ;;  %v3372_v23 = vld [vmem:[#allocation7 + $0xa8] sm:$0xff]   ;;  %v3373_v24 = vld [vmem:[#allocation7 + $0x70] sm:$0xff]   ;;  %v3377_v28 = vld [vmem:[#allocation7 + $0x78] sm:$0xff]  }
  0x77   :  { %3131 = vmatprep.subr.bf16.mxu1 %v3358_v9  ;;  %v3374_v25 = vld [vmem:[#allocation7 + $0xf0] sm:$0xff]   ;;  %v3378_v29 = vld [vmem:[#allocation7 + $0xf8] sm:$0xff]   ;;  %v134_v32 = vld [vmem:[#allocation4 + $0x1] ss:$2 sm:$0xff] }
  0x78   :  { %v3375_v26 = vld [vmem:[#allocation7 + $0x30] sm:$0xff]   ;;  %v3379_v30 = vld [vmem:[#allocation7 + $0x38] sm:$0xff]   ;;  %vm3856_vm2 = vmpackc.low %vm145_vm0, %vm3689_vm1 }
  0x79   :  { %3104 = vmatpush3.bf16.msra.mxu0 %v3359_v10  ;;  %v3376_v27 = vld [vmem:[#allocation7 + $0xb0] sm:$0xff]   ;;  %v3380_v31 = vld [vmem:[#allocation7 + $0xb8] sm:$0xff]   ;;  %v130_v39 = vld [vmem:[#allocation4] ss:$2 sm:$0xff] }
  0x7a   :  { %3132 = vmatpush3.bf16.msra.mxu1 %v3360_v11  ;;  %3105 = vmatprep.subr.bf16.mxu0 %v3361_v12  ;;  %v136_v33 = vld [vmem:[#allocation4 + $0x11] ss:$2 sm:$0x7f]  ;;  %v132_v40 = vld [vmem:[#allocation4 + $0x10] ss:$2 sm:$0x7f]  ;;  %vm2913_vm9 = vmpackc.low %vm642_vm8, %vm642_vm8 }
  0x7b   :  { %3133 = vmatprep.subr.bf16.mxu1 %v3362_v13  ;;  %v2858_v35 = vpack.c.bf16 %v136_v33, %v134_v32  ;;  %v142_v36 = vld [vmem:[#allocation4 + $0x3] ss:$2 sm:$0xff]  ;;  %v144_v37 = vld [vmem:[#allocation4 + $0x13] ss:$2 sm:$0x7f]  ;;  %v2861_v41 = vpack.c.bf16 %v132_v40, %v130_v39  ;;  %vm2957_vm13 = vmpackc.low %vm1089_vm12, %vm1089_vm12 }
  0x7c   :  { %v2870_v38 = vpack.c.bf16 %v144_v37, %v142_v36  ;;  %v138_v42 = vld [vmem:[#allocation4 + $0x2] ss:$2 sm:$0xff]  ;;  %v140_v43 = vld [vmem:[#allocation4 + $0x12] ss:$2 sm:$0x7f] }
  0x7d   :  { %3106 = vmatpush3.bf16.msra.mxu0 %v3363_v14  ;;  %2859 = vmatprep.mubr.msk.bf16.mxu0 %vm3856_vm2, %v2858_v35  ;;  %v2873_v44 = vpack.c.bf16 %v140_v43, %v138_v42  ;;  %v155_v45 = vld [vmem:[#allocation4 + $0x21] ss:$2 sm:$0xff]  ;;  %v157_v46 = vld [vmem:[#allocation4 + $0x31] ss:$2 sm:$0x7f] }
  0x7e   :  { %3134 = vmatpush3.bf16.msra.mxu1 %v3364_v15  ;;  %3107 = vmatprep.subr.bf16.mxu0 %v3365_v16  ;;  %v2864_v47 = vpack.c.bf16 %v157_v46, %v155_v45  ;;  %v163_v48 = vld [vmem:[#allocation4 + $0x23] ss:$2 sm:$0xff]  ;;  %v165_v49 = vld [vmem:[#allocation4 + $0x33] ss:$2 sm:$0x7f] }
  0x7f   :  { %3135 = vmatprep.subr.bf16.mxu1 %v3366_v17  ;;  %2871 = vmatprep.mubr.msk.bf16.mxu1 %vm3856_vm2, %v2870_v38  ;;  %v2876_v50 = vpack.c.bf16 %v165_v49, %v163_v48  ;;  %v151_v51 = vld [vmem:[#allocation4 + $0x20] ss:$2 sm:$0xff]  ;;  %v153_v52 = vld [vmem:[#allocation4 + $0x30] ss:$2 sm:$0x7f] }
  0x80   :  { %v159_v53 = vld [vmem:[#allocation4 + $0x22] ss:$2 sm:$0xff]  ;;  %v161_v54 = vld [vmem:[#allocation4 + $0x32] ss:$2 sm:$0x7f]  ;;  %v2867_v55 = vpack.c.bf16 %v153_v52, %v151_v51 }
  0x81   :  { %3108 = vmatpush3.bf16.msra.mxu0 %v3367_v18  ;;  %v2879_v56 = vpack.c.bf16 %v161_v54, %v159_v53  ;;  %v3382_v51 = vld [vmem:[#allocation9 + $0xc0] sm:$0xff]   ;;  %v3385_v54 = vld [vmem:[#allocation9 + $0x48] sm:$0xff]  }
  0x82   :  { %3136 = vmatpush3.bf16.msra.mxu1 %v3368_v19  ;;  %3109 = vmatprep.subr.bf16.mxu0 %v3369_v20  ;;  %v3383_v52 = vld [vmem:[#allocation9] sm:$0xff]  }
  0x83   :  { %3137 = vmatprep.subr.bf16.mxu1 %v3370_v21  ;;  %v3384_v53 = vld [vmem:[#allocation9 + $0x80] sm:$0xff]  }
  0x85   :  { %3110 = vmatpush3.bf16.msra.mxu0 %v3371_v22 }
  0x86   :  { %3138 = vmatpush3.bf16.msra.mxu1 %v3372_v23  ;;  %3111 = vmatprep.subr.bf16.mxu0 %v3373_v24 }
  0x87   :  { %3139 = vmatprep.subr.bf16.mxu1 %v3374_v25 }
  0x89   :  { %3112 = vmatpush3.bf16.msra.mxu0 %v3375_v26 }
  0x8a   :  { %3140 = vmatpush3.bf16.msra.mxu1 %v3376_v27  ;;  %3113 = vmatprep.subr.bf16.mxu0 %v3377_v28 }
  0x8b   :  { %3141 = vmatprep.subr.bf16.mxu1 %v3378_v29 }
  0x8d   :  { %3114 = vmatpush3.bf16.msra.mxu0 %v3379_v30 }
  0x8e   :  { %3142 = vmatpush3.bf16.msra.mxu1 %v3380_v31 }
  0x8f   :  { %3177 = vmatprep.subr.bf16.mxu1 %v3382_v51 }
  0x90   :  { %2862 = vmatmul.mubr.msk.bf16.vlgmr.msra.gmra.mrb[0].mxu0 %vm3856_vm2, %v2861_v41 }
  0x91   :  { %2874 = vmatmul.mubr.msk.bf16.vlgmr.msra.gmra.mrb[0].mxu1 %vm3856_vm2, %v2873_v44  ;;  %2865 = vmatprep.mubr.msk.bf16.mxu0 %vm3856_vm2, %v2864_v47 }
  0x92   :  { %2877 = vmatprep.mubr.msk.bf16.mxu1 %vm3856_vm2, %v2876_v50  ;;  %v3381_v50 = vld [vmem:[#allocation9 + $0x40] sm:$0xff]   ;;  %3178 = vmatpush3.bf16.msra.mxu1 %v3384_v53 }
  0x93   :  { %3155 = vmatprep.subr.bf16.mxu0 %v3381_v50 }
  0x94   :  { %3156 = vmatpush3.bf16.msra.mxu0 %v3383_v52 }
  0x95   :  { %3157 = vmatprep.subr.bf16.mxu0 %v3385_v54 }
  0x98   :  { %2868 = vmatmul.mubr.msk.bf16.gmra.mrb[4].mxu0 %vm3856_vm2, %v2867_v55  ;;  %v3386_v55 = vld [vmem:[#allocation9 + $0xc8] sm:$0xff]  }
  0x99   :  { %2880 = vmatmul.mubr.msk.bf16.gmra.mrb[4].mxu1 %vm3856_vm2, %v2879_v56  ;;  %v3387_v56 = vld [vmem:[#allocation9 + $0x8] sm:$0xff]   ;;  %3179 = vmatprep.subr.bf16.mxu1 %v3386_v55 }
  0x9a   :  { %3158 = vmatpush3.bf16.msra.mxu0 %v3387_v56 }
 0x163   :  { %v3115_v57 = vpop.f32.mrb[0].mxu0 }
 0x164   :  { %v3143_v58 = vpop.f32.mrb[0].mxu1  ;;  %v3116_v59 = vpop.f32.mrb[1].mxu0 }
 0x165   :  { %v3117_v60 = vadd.f32 %v3116_v59, %v3115_v57  ;;  %v3144_v61 = vpop.f32.mrb[1].mxu1  ;;  %v3118_v62 = vpop.f32.mrb[2].mxu0  ;;  %v3388_v57 = vld [vmem:[#allocation9 + $0x88] sm:$0xff]   ;;  %v3390_v59 = vld [vmem:[#allocation9 + $0xd0] sm:$0xff]  }
 0x166   :  { %v3145_v63 = vadd.f32 %v3144_v61, %v3143_v58  ;;  %v3146_v0 = vpop.f32.mrb[2].mxu1  ;;  %v3119_v1 = vpop.f32.mrb[3].mxu0  ;;  %3180 = vmatpush3.bf16.msra.mxu1 %v3388_v57  ;;  %v3389_v58 = vld [vmem:[#allocation9 + $0x50] sm:$0xff]  }
 0x167   :  { %v3120_v2 = vadd.f32 %v3119_v1, %v3118_v62  ;;  %v3147_v3 = vpop.f32.mrb[3].mxu1  ;;  %v3392_v61 = vld [vmem:[#allocation9 + $0x90] sm:$0xff]   ;;  %3159 = vmatprep.subr.bf16.mxu0 %v3389_v58  ;;  %3181 = vmatprep.subr.bf16.mxu1 %v3390_v59  ;;  %v3393_v62 = vld [vmem:[#allocation9 + $0x58] sm:$0xff]  }
 0x168   :  { %v3876_v4 = vadd.f32 %v3145_v63, %v3117_v60  ;;  %v3148_v5 = vadd.f32 %v3147_v3, %v3146_v0  ;;  %v3391_v60 = vld [vmem:[#allocation9 + $0x10] sm:$0xff]   ;;  %v3394_v63 = vld [vmem:[#allocation9 + $0xd8] sm:$0xff]   ;;  %v3398_v3 = vld [vmem:[#allocation9 + $0xe0] sm:$0xff]  }
 0x169   :  { %3160 = vmatpush3.bf16.msra.mxu0 %v3391_v60  ;;  %v3395_v0 = vld [vmem:[#allocation9 + $0x18] sm:$0xff]  }
 0x16a   :  { %v3878_v6 = vadd.f32 %v3148_v5, %v3120_v2  ;;  %v541_v19 = vmul.f32 %v3876_v4, %v3876_v4  ;;  %3182 = vmatpush3.bf16.msra.mxu1 %v3392_v61  ;;  %v3396_v1 = vld [vmem:[#allocation9 + $0x98] sm:$0xff]   ;;  %3161 = vmatprep.subr.bf16.mxu0 %v3393_v62  ;;  %v3397_v2 = vld [vmem:[#allocation9 + $0x60] sm:$0xff]  }
 0x16b   :  { %v3121_v7 = vpop.f32.mrb[4].mxu0  ;;  %3183 = vmatprep.subr.bf16.mxu1 %v3394_v63  ;;  %v3399_v5 = vld [vmem:[#allocation9 + $0x20] sm:$0xff]  }
 0x16c   :  { %v3149_v8 = vpop.f32.mrb[4].mxu1  ;;  %v3122_v9 = vpop.f32.mrb[5].mxu0  ;;  %v542_v13 = vmul.f32 %v3878_v6, %v3878_v6  ;;  %v532_v20 = vadd.f32 %v3878_v6, %v3876_v4 }
 0x16d   :  { %v3123_v10 = vadd.f32 %v3122_v9, %v3121_v7  ;;  %v3150_v11 = vpop.f32.mrb[5].mxu1  ;;  %v3124_v12 = vpop.f32.mrb[6].mxu0  ;;  %3162 = vmatpush3.bf16.msra.mxu0 %v3395_v0  ;;  %v3400_v7 = vld [vmem:[#allocation9 + $0xa0] sm:$0xff]   ;;  %v3402_v9 = vld [vmem:[#allocation9 + $0xe8] sm:$0xff]  }
 0x16e   :  { %v3151_v14 = vadd.f32 %v3150_v11, %v3149_v8  ;;  %v3152_v15 = vpop.f32.mrb[6].mxu1  ;;  %v3125_v16 = vpop.f32.mrb[7].mxu0  ;;  %v545_v23 = vadd.f32 %v542_v13, %v541_v19  ;;  %3184 = vmatpush3.bf16.msra.mxu1 %v3396_v1  ;;  %3163 = vmatprep.subr.bf16.mxu0 %v3397_v2  ;;  %v3401_v8 = vld [vmem:[#allocation9 + $0x68] sm:$0xff]   ;;  %v3406_v13 = vld [vmem:[#allocation9 + $0xf0] sm:$0xff]   ;;  %v3412_v19 = vld [vmem:[#allocation9 + $0xb8] sm:$0xff]  }
 0x16f   :  { %v3126_v17 = vadd.f32 %v3125_v16, %v3124_v12  ;;  %v3153_v18 = vpop.f32.mrb[7].mxu1  ;;  %3185 = vmatprep.subr.bf16.mxu1 %v3398_v3  ;;  %v3404_v11 = vld [vmem:[#allocation9 + $0xa8] sm:$0xff]   ;;  %v3405_v12 = vld [vmem:[#allocation9 + $0x70] sm:$0xff]   ;;  %v3409_v16 = vld [vmem:[#allocation9 + $0x78] sm:$0xff]  }
 0x170   :  { %v3886_v21 = vadd.f32 %v3151_v14, %v3123_v10  ;;  %v3154_v22 = vadd.f32 %v3153_v18, %v3152_v15  ;;  %v3403_v10 = vld [vmem:[#allocation9 + $0x28] sm:$0xff]   ;;  %v3407_v14 = vld [vmem:[#allocation9 + $0x30] sm:$0xff]   ;;  %v3411_v18 = vld [vmem:[#allocation9 + $0x38] sm:$0xff]  }
 0x171   :  { %3164 = vmatpush3.bf16.msra.mxu0 %v3399_v5  ;;  %v3408_v15 = vld [vmem:[#allocation9 + $0xb0] sm:$0xff]  }
 0x172   :  { %v533_v24 = vadd.f32 %v532_v20, %v3886_v21  ;;  %v543_v25 = vmul.f32 %v3886_v21, %v3886_v21  ;;  %v3891_v26 = vadd.f32 %v3154_v22, %v3126_v17  ;;  %3186 = vmatpush3.bf16.msra.mxu1 %v3400_v7  ;;  %3165 = vmatprep.subr.bf16.mxu0 %v3401_v8  ;;  %v3410_v17 = vld [vmem:[#allocation9 + $0xf8] sm:$0xff]  }
 0x173   :  { %3187 = vmatprep.subr.bf16.mxu1 %v3402_v9 }
 0x174   :  { %v546_v27 = vadd.f32 %v545_v23, %v543_v25  ;;  %v534_v28 = vadd.f32 %v533_v24, %v3891_v26  ;;  %v544_v29 = vmul.f32 %v3891_v26, %v3891_v26 }
 0x175   :  { %3166 = vmatpush3.bf16.msra.mxu0 %v3403_v10 }
 0x176   :  { %v535_v30 = vrot.slane %v534_v28, 4  ;;  %v547_v31 = vadd.f32 %v546_v27, %v544_v29  ;;  %3188 = vmatpush3.bf16.msra.mxu1 %v3404_v11  ;;  %3167 = vmatprep.subr.bf16.mxu0 %v3405_v12 }
 0x177   :  { %3189 = vmatprep.subr.bf16.mxu1 %v3406_v13 }
 0x178   :  { %v536_v32 = vadd.f32 %v535_v30, %v534_v28  ;;  %v548_v33 = vrot.slane %v547_v31, 4  ;;  %v3691_v30 = vmov 1966171168  }
 0x179   :  { %3168 = vmatpush3.bf16.msra.mxu0 %v3407_v14 }
 0x17a   :  { %v537_v34 = vrot.slane %v536_v32, 2  ;;  %v549_v35 = vadd.f32 %v548_v33, %v547_v31  ;;  %3190 = vmatpush3.bf16.msra.mxu1 %v3408_v15  ;;  %3169 = vmatprep.subr.bf16.mxu0 %v3409_v16  ;;  %v580_v31 = vunpack.c.l.s4 %v3691_v30 }
 0x17b   :  { %3191 = vmatprep.subr.bf16.mxu1 %v3410_v17 }
 0x17c   :  { %v538_v36 = vadd.f32 %v537_v34, %v536_v32  ;;  %v550_v37 = vrot.slane %v549_v35, 2  ;;  %v582_v32 = vlaneseq  ;;  %v581_v33 = vunpack.c.0.s8 %v580_v31 }
 0x17d   :  { %3170 = vmatpush3.bf16.msra.mxu0 %v3411_v18 }
 0x17e   :  { %v539_v38 = vrot.slane %v538_v36, 1  ;;  %v551_v39 = vadd.f32 %v550_v37, %v549_v35  ;;  %3192 = vmatpush3.bf16.msra.mxu1 %v3412_v19  ;;  %v3905_v34 = vshrl.u32 %v582_v32, 7 }
 0x180   :  { %v552_v40 = vrot.slane %v551_v39, 1  ;;  %v540_v41 = vadd.f32 %v539_v38, %v538_v36  ;;  %v3908_v35 = vsub.s32 %v581_v33, %v3905_v34 }
 0x182   :  { %v553_v42 = vadd.f32 %v552_v40, %v551_v39  ;;  %v575_v39 = vld [vmem:[%s4025_s2] sm:$0x1]  ;;  %v3915_v40 = vsub.s32 0, %v3905_v34 }
 0x184   :  { %v555_v43 = vsel %vm554_vm3, %v540_v41, %v553_v42 }
 0x185   :  { %556 = vrot.lane.b32.xlu0 %v555_v43, %s3683_s28 }
 0x1f7   :  { %v557_v44 = vpop.permute.xlu0 %556 }
 0x1f8   :  { %v558_v45 = vadd.f32 %v557_v44, %v555_v43  ;;  %v596_v43 = vld [vmem:[%s4026_s3] sm:$0x1] }
 0x1fa   :  { %559 = vrot.lane.b32.xlu0 %v558_v45, %s3690_s11 }
 0x26c   :  { %v560_v46 = vpop.permute.xlu0 %559 }
 0x26d   :  { %v561_v47 = vadd.f32 %v560_v46, %v558_v45 }
 0x26f   :  { %562 = vrot.lane.b32.xlu1 %v561_v47, %s3687_s30 }
 0x2e1   :  { %v563_v48 = vpop.permute.xlu1 %562 }
 0x2e2   :  { %v3900_v49 = vadd.f32 %v563_v48, %v561_v47 }
 0x2e4   :  { %565 = vrot.lane.b32.xlu1 %v3900_v49, %s3678_s23 }
 0x356   :  { %v566_v20 = vpop.permute.xlu1 %565 }
 0x357   :  { %v567_v22 = vadd.f32 %v566_v20, %v3900_v49 }
 0x359   :  { %v568_v23 = vmul.f32 0.0022222223, %v567_v22 }
 0x35b   :  { %v569_v24 = vmul.f32 %v568_v23, %v568_v23 }
 0x35d   :  { %v571_v25 = vrot.slane %v569_v24, 7 }
 0x35f   :  { %v573_v27 = vsub.f32 %v568_v23, %v571_v25 }
 0x361   :  { %v574_v28 = vmax.f32 %v573_v27, 0.0 }
 0x363   :  { %v576_v29 = vadd.f32 1e-05, %v574_v28 }
 0x365   :  { %3509 = vrsqrt.f32 %v576_v29 }
 0x36f   :  { %v3510_v36 = vpop.eup %3509 }
 0x370   :  { %v585_v37 = vrot.slane %v3510_v36, %v3908_v35 }
 0x372   :  { %v586_v38 = vcombine.high %v585_v37, %v585_v37 }
 0x374   :  { %v593_v41 = vrot.slane %v586_v38, %v3908_v35 }
 0x376   :  { %v595_v42 = vmul.f32 %v593_v41, %v575_v39 }
 0x378   :  { %v597_v44 = vmul.f32 %v595_v42, %v568_v23  ;;  %v603_v45 = vrot.slane %v595_v42, %v3915_v40 }
 0x37a   :  { %v598_v46 = vsub.f32 %v596_v43, %v597_v44  ;;  %v605_v47 = vmul.f32 %v603_v45, %v3876_v4  ;;  %v606_v48 = vmul.f32 %v603_v45, %v3878_v6  ;;  %v607_v49 = vmul.f32 %v603_v45, %v3886_v21 }
 0x37b   :  { %v608_v50 = vmul.f32 %v603_v45, %v3891_v26 }
 0x37c   :  { %v613_v51 = vrot.slane %v598_v46, %v3915_v40 }
 0x37e   :  { %v615_v52 = vadd.f32 %v613_v51, %v605_v47  ;;  %v616_v53 = vadd.f32 %v613_v51, %v606_v48  ;;  %v617_v54 = vadd.f32 %v613_v51, %v607_v49  ;;  %v618_v55 = vadd.f32 %v613_v51, %v608_v50  ;;  %v3413_v50 = vld [vmem:[#allocation10 + $0x40] sm:$0xff]  }
 0x37f   :  { %v3414_v51 = vld [vmem:[#allocation10 + $0xc0] sm:$0xff]   ;;  %3199 = vmatprep.subr.bf16.mxu0 %v3413_v50 }
 0x380   :  { %vm619_vm4 = vcmp.gt.f32.partialorder %v615_v52, 0.0  ;;  %vm620_vm5 = vcmp.gt.f32.partialorder %v616_v53, 0.0  ;;  %vm621_vm6 = vcmp.gt.f32.partialorder %v617_v54, 0.0  ;;  %vm622_vm7 = vcmp.gt.f32.partialorder %v618_v55, 0.0  ;;  %3221 = vmatprep.subr.bf16.mxu1 %v3414_v51 }
 0x381   :  { %v623_v56 = vmul.f32 0.2, %v615_v52  ;;  %v624_v57 = vmul.f32 0.2, %v616_v53  ;;  %v625_v58 = vmul.f32 0.2, %v617_v54 }
 0x382   :  { %v626_v4 = vmul.f32 0.2, %v618_v55 }
 0x383   :  { %v627_v59 = vsel %vm619_vm4, %v615_v52, %v623_v56  ;;  %v628_v6 = vsel %vm620_vm5, %v616_v53, %v624_v57  ;;  %v629_v60 = vsel %vm621_vm6, %v617_v54, %v625_v58  ;;  %v3415_v52 = vld [vmem:[#allocation10] sm:$0xff]   ;;  %v3417_v54 = vld [vmem:[#allocation10 + $0x48] sm:$0xff]   ;;  %v3421_v58 = vld [vmem:[#allocation10 + $0x50] sm:$0xff]  }
 0x384   :  { %v630_v21 = vsel %vm622_vm7, %v618_v55, %v626_v4  ;;  %631 = vst [vmem:[#allocation2] sm:$0xff] %v627_v59  ;;  %632 = vst [vmem:[#allocation2 + $0x8] sm:$0xff] %v628_v6  ;;  %v3416_v53 = vld [vmem:[#allocation10 + $0x80] sm:$0xff]   ;;  %v3418_v55 = vld [vmem:[#allocation10 + $0xc8] sm:$0xff]  }
 0x385   :  { %633 = vst [vmem:[#allocation2 + $0x10] sm:$0xff] %v629_v60  ;;  %634 = vst [vmem:[#allocation2 + $0x18] sm:$0xff] %v630_v21  ;;  %v3419_v56 = vld [vmem:[#allocation10 + $0x8] sm:$0xff]   ;;  %v3422_v4 = vld [vmem:[#allocation10 + $0xd0] sm:$0xff]  }
 0x386   :  { %v3420_v57 = vld [vmem:[#allocation10 + $0x88] sm:$0xff]   ;;  %v3423_v59 = vld [vmem:[#allocation10 + $0x10] sm:$0xff]   ;;  %v3425_v60 = vld [vmem:[#allocation10 + $0x58] sm:$0xff]  }
 0x387   :  { %v3424_v6 = vld [vmem:[#allocation10 + $0x90] sm:$0xff]   ;;  %v3426_v21 = vld [vmem:[#allocation10 + $0xd8] sm:$0xff]  }
 0x38b   :  { %v637_v26 = vld [vmem:[#allocation2 + $0x1] ss:$2 sm:$0x3f]  ;;  %v635_v2 = vld [vmem:[#allocation2] ss:$2 sm:$0x3f] }
 0x38c   :  { %v641_v61 = vld [vmem:[#allocation2 + $0x3] ss:$2 sm:$0x3f]  ;;  %v650_v62 = vld [vmem:[#allocation2 + $0x11] ss:$2 sm:$0x3f] }
 0x38d   :  { %v654_v63 = vld [vmem:[#allocation2 + $0x13] ss:$2 sm:$0x3f]  ;;  %v2914_v0 = vpack.c.bf16 %v650_v62, %v637_v26  ;;  %v648_v3 = vld [vmem:[#allocation2 + $0x10] ss:$2 sm:$0x3f] }
 0x38e   :  { %v2920_v1 = vpack.c.bf16 %v654_v63, %v641_v61  ;;  %v2917_v5 = vpack.c.bf16 %v648_v3, %v635_v2  ;;  %v639_v7 = vld [vmem:[#allocation2 + $0x2] ss:$2 sm:$0x3f]  ;;  %v652_v8 = vld [vmem:[#allocation2 + $0x12] ss:$2 sm:$0x3f] }
 0x38f   :  { %2915 = vmatprep.mubr.msk.bf16.mxu0 %vm2913_vm9, %v2914_v0  ;;  %v2923_v9 = vpack.c.bf16 %v652_v8, %v639_v7  ;;  %v3427_v26 = vld [vmem:[#allocation10 + $0x18] sm:$0xff]   ;;  %v3429_v62 = vld [vmem:[#allocation10 + $0x60] sm:$0xff]   ;;  %v3433_v2 = vld [vmem:[#allocation10 + $0x68] sm:$0xff]  }
 0x390   :  { %2921 = vmatprep.mubr.msk.bf16.mxu1 %vm2913_vm9, %v2920_v1  ;;  %2918 = vmatmul.mubr.msk.bf16.vlgmr.msra.gmra.mrb[8].mxu0 %vm2913_vm9, %v2917_v5  ;;  %v3428_v61 = vld [vmem:[#allocation10 + $0x98] sm:$0xff]   ;;  %v3430_v63 = vld [vmem:[#allocation10 + $0xe0] sm:$0xff]   ;;  %v3434_v3 = vld [vmem:[#allocation10 + $0xe8] sm:$0xff]  }
 0x391   :  { %2924 = vmatmul.mubr.msk.bf16.vlgmr.msra.gmra.mrb[8].mxu1 %vm2913_vm9, %v2923_v9  ;;  %3200 = vmatpush3.bf16.msra.mxu0 %v3415_v52  ;;  %v3431_v0 = vld [vmem:[#allocation10 + $0x20] sm:$0xff]   ;;  %v3435_v5 = vld [vmem:[#allocation10 + $0x28] sm:$0xff]   ;;  %v3437_v8 = vld [vmem:[#allocation10 + $0x70] sm:$0xff]  }
 0x392   :  { %3222 = vmatpush3.bf16.msra.mxu1 %v3416_v53  ;;  %3201 = vmatprep.subr.bf16.mxu0 %v3417_v54  ;;  %v3432_v1 = vld [vmem:[#allocation10 + $0xa0] sm:$0xff]   ;;  %v3436_v7 = vld [vmem:[#allocation10 + $0xa8] sm:$0xff]   ;;  %v3438_v9 = vld [vmem:[#allocation10 + $0xf0] sm:$0xff]  }
 0x393   :  { %3223 = vmatprep.subr.bf16.mxu1 %v3418_v55 }
 0x395   :  { %3202 = vmatpush3.bf16.msra.mxu0 %v3419_v56 }
 0x396   :  { %3224 = vmatpush3.bf16.msra.mxu1 %v3420_v57  ;;  %3203 = vmatprep.subr.bf16.mxu0 %v3421_v58 }
 0x397   :  { %3225 = vmatprep.subr.bf16.mxu1 %v3422_v4 }
 0x399   :  { %3204 = vmatpush3.bf16.msra.mxu0 %v3423_v59 }
 0x39a   :  { %3226 = vmatpush3.bf16.msra.mxu1 %v3424_v6  ;;  %3205 = vmatprep.subr.bf16.mxu0 %v3425_v60 }
 0x39b   :  { %3227 = vmatprep.subr.bf16.mxu1 %v3426_v21 }
 0x39d   :  { %3206 = vmatpush3.bf16.msra.mxu0 %v3427_v26 }
 0x39e   :  { %3228 = vmatpush3.bf16.msra.mxu1 %v3428_v61  ;;  %3207 = vmatprep.subr.bf16.mxu0 %v3429_v62 }
 0x39f   :  { %3229 = vmatprep.subr.bf16.mxu1 %v3430_v63 }
 0x3a1   :  { %3208 = vmatpush3.bf16.msra.mxu0 %v3431_v0 }
 0x3a2   :  { %3230 = vmatpush3.bf16.msra.mxu1 %v3432_v1  ;;  %3209 = vmatprep.subr.bf16.mxu0 %v3433_v2 }
 0x3a3   :  { %3231 = vmatprep.subr.bf16.mxu1 %v3434_v3 }
 0x3a5   :  { %3210 = vmatpush3.bf16.msra.mxu0 %v3435_v5 }
 0x3a6   :  { %3232 = vmatpush3.bf16.msra.mxu1 %v3436_v7  ;;  %3211 = vmatprep.subr.bf16.mxu0 %v3437_v8 }
 0x3a7   :  { %3233 = vmatprep.subr.bf16.mxu1 %v3438_v9 }
 0x463   :  { %v3171_v10 = vpop.f32.mrb[8].mxu0 }
 0x464   :  { %v3193_v11 = vpop.f32.mrb[8].mxu1  ;;  %v3172_v12 = vpop.f32.mrb[9].mxu0 }
 0x465   :  { %v3173_v13 = vadd.f32 %v3172_v12, %v3171_v10  ;;  %v3194_v14 = vpop.f32.mrb[9].mxu1  ;;  %v3174_v15 = vpop.f32.mrb[10].mxu0  ;;  %v3439_v10 = vld [vmem:[#allocation10 + $0x30] sm:$0xff]   ;;  %v3441_v12 = vld [vmem:[#allocation10 + $0x78] sm:$0xff]  }
 0x466   :  { %v3195_v16 = vadd.f32 %v3194_v14, %v3193_v11  ;;  %v3196_v17 = vpop.f32.mrb[10].mxu1  ;;  %v3175_v18 = vpop.f32.mrb[11].mxu0  ;;  %v3440_v11 = vld [vmem:[#allocation10 + $0xb0] sm:$0xff]   ;;  %3212 = vmatpush3.bf16.msra.mxu0 %v3439_v10  ;;  %v3443_v14 = vld [vmem:[#allocation10 + $0x38] sm:$0xff]  }
 0x467   :  { %v3176_v19 = vadd.f32 %v3175_v18, %v3174_v15  ;;  %v3197_v20 = vpop.f32.mrb[11].mxu1  ;;  %3234 = vmatpush3.bf16.msra.mxu1 %v3440_v11  ;;  %v3444_v15 = vld [vmem:[#allocation10 + $0xb8] sm:$0xff]   ;;  %3213 = vmatprep.subr.bf16.mxu0 %v3441_v12 }
 0x468   :  { %v3927_v22 = vadd.f32 %v3195_v16, %v3173_v13  ;;  %v3198_v23 = vadd.f32 %v3197_v20, %v3196_v17  ;;  %v3442_v13 = vld [vmem:[#allocation10 + $0xf8] sm:$0xff]  }
 0x469   :  { %3235 = vmatprep.subr.bf16.mxu1 %v3442_v13 }
 0x46a   :  { %v3929_v24 = vadd.f32 %v3198_v23, %v3176_v19  ;;  %v1008_v25 = vmul.f32 %v3927_v22, %v3927_v22  ;;  %3214 = vmatpush3.bf16.msra.mxu0 %v3443_v14  ;;  %v1479_v14 = vld [vmem:[#allocation12] sm:$0xff] }
 0x46b   :  { %3236 = vmatpush3.bf16.msra.mxu1 %v3444_v15  ;;  %v1483_v15 = vld [vmem:[#allocation12 + $0x20] sm:$0xff] }
 0x46c   :  { %v1001_v27 = vadd.f32 %v3929_v24, %v3927_v22  ;;  %v1009_v28 = vmul.f32 %v3929_v24, %v3929_v24 }
 0x46e   :  { %v1002_v29 = vrot.slane %v1001_v27, 4  ;;  %v1010_v30 = vadd.f32 %v1009_v28, %v1008_v25 }
 0x470   :  { %v1003_v31 = vadd.f32 %v1002_v29, %v1001_v27  ;;  %v1011_v32 = vrot.slane %v1010_v30, 4 }
 0x472   :  { %v1004_v33 = vrot.slane %v1003_v31, 2  ;;  %v1012_v36 = vadd.f32 %v1011_v32, %v1010_v30 }
 0x474   :  { %v1005_v37 = vadd.f32 %v1004_v33, %v1003_v31  ;;  %v1013_v38 = vrot.slane %v1012_v36, 2  ;;  %v1034_v31 = vld [vmem:[%s4028_s5] sm:$0x1] }
 0x476   :  { %v1006_v39 = vrot.slane %v1005_v37, 1  ;;  %v1014_v41 = vadd.f32 %v1013_v38, %v1012_v36  ;;  %v1055_v36 = vld [vmem:[%s4029_s6] sm:$0x1] }
 0x478   :  { %v1015_v42 = vrot.slane %v1014_v41, 1  ;;  %v1007_v43 = vadd.f32 %v1006_v39, %v1005_v37 }
 0x47a   :  { %v1016_v44 = vadd.f32 %v1015_v42, %v1014_v41 }
 0x47c   :  { %v1017_v45 = vsel %vm554_vm3, %v1007_v43, %v1016_v44 }
 0x47d   :  { %1018 = vrot.lane.b32.xlu0 %v1017_v45, %s3690_s11 }
 0x4ef   :  { %v1019_v46 = vpop.permute.xlu0 %1018 }
 0x4f0   :  { %v1020_v47 = vadd.f32 %v1019_v46, %v1017_v45 }
 0x4f2   :  { %1021 = vrot.lane.b32.xlu1 %v1020_v47, %s3687_s30 }
 0x564   :  { %v1022_v48 = vpop.permute.xlu1 %1021 }
 0x565   :  { %v3940_v49 = vadd.f32 %v1022_v48, %v1020_v47 }
 0x567   :  { %1024 = vrot.lane.b32.xlu0 %v3940_v49, %s3678_s23 }
 0x5d9   :  { %v1025_v16 = vpop.permute.xlu0 %1024 }
 0x5da   :  { %v1026_v17 = vadd.f32 %v1025_v16, %v3940_v49  ;;  %v1480_v16 = vld [vmem:[#allocation12 + $0x8] sm:$0xff] }
 0x5dc   :  { %v1027_v18 = vmul.f32 0.013888889, %v1026_v17  ;;  %v2970_v17 = vcombine.low %v1479_v14, %v1483_v15 }
 0x5de   :  { %v1028_v19 = vmul.f32 %v1027_v18, %v1027_v18 }
 0x5e0   :  { %v1030_v20 = vrot.slane %v1028_v19, 7  ;;  %v1484_v19 = vld [vmem:[#allocation12 + $0x28] sm:$0xff] }
 0x5e2   :  { %v1032_v23 = vsub.f32 %v1027_v18, %v1030_v20  ;;  %v1487_v20 = vld [vmem:[#allocation12 + $0x40] sm:$0xff] }
 0x5e4   :  { %v1033_v25 = vmax.f32 %v1032_v23, 0.0  ;;  %v1491_v23 = vld [vmem:[#allocation12 + $0x60] sm:$0xff] }
 0x5e6   :  { %v1035_v27 = vadd.f32 1e-05, %v1033_v25 }
 0x5e8   :  { %3511 = vrsqrt.f32 %v1035_v27 }
 0x5f2   :  { %v3512_v28 = vpop.eup %3511 }
 0x5f3   :  { %v1044_v29 = vrot.slane %v3512_v28, %v3908_v35  ;;  %v2972_v28 = vcombine.low %v1480_v16, %v1484_v19 }
 0x5f5   :  { %v1045_v30 = vcombine.high %v1044_v29, %v1044_v29  ;;  %v2973_v29 = vcombine.high %v1480_v16, %v1484_v19  ;;  %v1535_v16 = vld [vmem:[#allocation12 + $0x1c0] sm:$0xff] }
 0x5f7   :  { %v1052_v32 = vrot.slane %v1045_v30, %v3908_v35  ;;  %v1488_v30 = vld [vmem:[#allocation12 + $0x48] sm:$0xff]  ;;  %1946 = vmatprep.subr.bf16.mxu1 %v2973_v29  ;;  %v1485_v29 = vld [vmem:[#allocation12 + $0x30] sm:$0xff] }
 0x5f9   :  { %v1054_v33 = vmul.f32 %v1052_v32, %v1034_v31  ;;  %v1492_v31 = vld [vmem:[#allocation12 + $0x68] sm:$0xff]  ;;  %v1495_v32 = vld [vmem:[#allocation12 + $0x80] sm:$0xff] }
 0x5fb   :  { %v1056_v37 = vmul.f32 %v1054_v33, %v1027_v18  ;;  %v1062_v38 = vrot.slane %v1054_v33, %v3915_v40  ;;  %v2971_v18 = vcombine.high %v1479_v14, %v1483_v15  ;;  %v2979_v33 = vcombine.high %v1487_v20, %v1491_v23 }
 0x5fd   :  { %v1057_v39 = vsub.f32 %v1055_v36, %v1056_v37  ;;  %v1064_v41 = vmul.f32 %v1062_v38, %v3927_v22  ;;  %v1065_v42 = vmul.f32 %v1062_v38, %v3929_v24  ;;  %1905 = vmatprep.subr.bf16.mxu0 %v2971_v18  ;;  %v2981_v36 = vcombine.high %v1488_v30, %v1492_v31  ;;  %v1499_v37 = vld [vmem:[#allocation12 + $0xa0] sm:$0xff]  ;;  %v1496_v38 = vld [vmem:[#allocation12 + $0x88] sm:$0xff] }
 0x5fe   :  { %v1536_v18 = vld [vmem:[#allocation12 + $0x1c8] sm:$0xff] }
 0x5ff   :  { %v1070_v43 = vrot.slane %v1057_v39, %v3915_v40  ;;  %v1500_v39 = vld [vmem:[#allocation12 + $0xa8] sm:$0xff] }
 0x601   :  { %v1072_v44 = vadd.f32 %v1070_v43, %v1064_v41  ;;  %v1073_v45 = vadd.f32 %v1070_v43, %v1065_v42  ;;  %v2978_v43 = vcombine.low %v1487_v20, %v1491_v23  ;;  %v1540_v20 = vld [vmem:[#allocation12 + $0x1e8] sm:$0xff] }
 0x603   :  { %vm1074_vm10 = vcmp.gt.f32.partialorder %v1072_v44, 0.0  ;;  %vm1075_vm11 = vcmp.gt.f32.partialorder %v1073_v45, 0.0  ;;  %v1076_v35 = vmul.f32 0.2, %v1072_v44  ;;  %v1077_v46 = vmul.f32 0.2, %v1073_v45 }
 0x605   :  { %v1078_v47 = vsel %vm1074_vm10, %v1072_v44, %v1076_v35  ;;  %v1079_v48 = vsel %vm1075_vm11, %v1073_v45, %v1077_v46  ;;  %v2980_v44 = vcombine.low %v1488_v30, %v1492_v31  ;;  %v2987_v45 = vcombine.high %v1495_v32, %v1499_v37  ;;  %v1482_v30 = vld [vmem:[#allocation12 + $0x18] sm:$0xff] }
 0x606   :  { %1080 = vst [vmem:[#allocation3] sm:$0xff] %v1078_v47  ;;  %1081 = vst [vmem:[#allocation3 + $0x8] sm:$0xff] %v1079_v48  ;;  %v2989_v46 = vcombine.high %v1496_v38, %v1500_v39  ;;  %v1503_v47 = vld [vmem:[#allocation12 + $0xc0] sm:$0xff] }
 0x607   :  { %v1507_v48 = vld [vmem:[#allocation12 + $0xe0] sm:$0xff] }
 0x60d   :  { %v1084_v49 = vld [vmem:[#allocation3 + $0x1] ss:$2 sm:$0x3]  ;;  %v1097_v50 = vld [vmem:[#allocation3 + $0x9] ss:$2 sm:$0x3] }
 0x60e   :  { %v2958_v22 = vpack.c.bf16 %v1097_v50, %v1084_v49  ;;  %v1088_v24 = vld [vmem:[#allocation3 + $0x3] ss:$2 sm:$0x3]  ;;  %v1101_v51 = vld [vmem:[#allocation3 + $0xb] ss:$2 sm:$0x3] }
 0x60f   :  { %v2964_v52 = vpack.c.bf16 %v1101_v51, %v1088_v24  ;;  %v1082_v53 = vld [vmem:[#allocation3] ss:$2 sm:$0x3]  ;;  %v1095_v54 = vld [vmem:[#allocation3 + $0x8] ss:$2 sm:$0x3]  ;;  %v2986_v51 = vcombine.low %v1495_v32, %v1499_v37 }
 0x610   :  { %2959 = vmatprep.mubr.msk.bf16.mxu0 %vm2957_vm13, %v2958_v22  ;;  %v2961_v55 = vpack.c.bf16 %v1095_v54, %v1082_v53  ;;  %v1086_v56 = vld [vmem:[#allocation3 + $0x2] ss:$2 sm:$0x3]  ;;  %v1099_v57 = vld [vmem:[#allocation3 + $0xa] ss:$2 sm:$0x3]  ;;  %v2995_v53 = vcombine.high %v1503_v47, %v1507_v48 }
 0x611   :  { %2965 = vmatprep.mubr.msk.bf16.mxu1 %vm2957_vm13, %v2964_v52  ;;  %v2967_v58 = vpack.c.bf16 %v1099_v57, %v1086_v56  ;;  %v1504_v49 = vld [vmem:[#allocation12 + $0xc8] sm:$0xff]  ;;  %v2988_v52 = vcombine.low %v1496_v38, %v1500_v39  ;;  %v1511_v56 = vld [vmem:[#allocation12 + $0x100] sm:$0xff] }
 0x612   :  { %2962 = vmatmul.mubr.msk.bf16.vlgmr.msra.gmra.mrb[12].mxu0 %vm2957_vm13, %v2961_v55  ;;  %v1508_v50 = vld [vmem:[#allocation12 + $0xe8] sm:$0xff]  ;;  %v1515_v57 = vld [vmem:[#allocation12 + $0x120] sm:$0xff] }
 0x613   :  { %2968 = vmatmul.mubr.msk.bf16.vlgmr.msra.gmra.mrb[12].mxu1 %vm2957_vm13, %v2967_v58  ;;  %1906 = vmatpush1.bf16.msra.mxu0 %v2970_v17  ;;  %v2997_v55 = vcombine.high %v1504_v49, %v1508_v50  ;;  %v1512_v58 = vld [vmem:[#allocation12 + $0x108] sm:$0xff]  ;;  %v1539_v17 = vld [vmem:[#allocation12 + $0x1e0] sm:$0xff] }
 0x614   :  { %1947 = vmatpush1.bf16.msra.mxu1 %v2972_v28  ;;  %1907 = vmatprep.subr.bf16.mxu0 %v2979_v33  ;;  %v3027_v19 = vcombine.high %v1535_v16, %v1539_v17  ;;  %v3026_v23 = vcombine.low %v1535_v16, %v1539_v17  ;;  %v1481_v28 = vld [vmem:[#allocation12 + $0x10] sm:$0xff]  ;;  %v1486_v33 = vld [vmem:[#allocation12 + $0x38] sm:$0xff] }
 0x615   :  { %1948 = vmatprep.subr.bf16.mxu1 %v2981_v36  ;;  %v2974_v31 = vcombine.low %v1481_v28, %v1485_v29  ;;  %v2975_v32 = vcombine.high %v1481_v28, %v1485_v29  ;;  %v3692_v36 = vmov 0   ;;  %v2976_v37 = vcombine.low %v1482_v30, %v1486_v33  ;;  %v1529_v17 = vld [vmem:[#allocation12 + $0x190] sm:$0xff] }
 0x616   :  { %1937 = vmatprep.mubr.bf16.mxu0 %v3692_v36  ;;  %1978 = vmatprep.mubr.bf16.mxu1 %v3692_v36  ;;  %v2977_v38 = vcombine.high %v1482_v30, %v1486_v33  ;;  %v1537_v29 = vld [vmem:[#allocation12 + $0x1d0] sm:$0xff] }
 0x617   :  { %1908 = vmatpush1.bf16.msra.mxu0 %v2978_v43  ;;  %v1541_v30 = vld [vmem:[#allocation12 + $0x1f0] sm:$0xff] }
 0x618   :  { %1949 = vmatpush1.bf16.msra.mxu1 %v2980_v44  ;;  %1909 = vmatprep.subr.bf16.mxu0 %v2987_v45  ;;  %v2969_v44 = vld [vmem:[%s4031_s8] ss:$0 sm:$0xff] }
 0x619   :  { %1950 = vmatprep.subr.bf16.mxu1 %v2989_v46  ;;  %v1493_v46 = vld [vmem:[#allocation12 + $0x70] sm:$0xff] }
 0x61b   :  { %1910 = vmatpush1.bf16.msra.mxu0 %v2986_v51  ;;  %v1497_v51 = vld [vmem:[#allocation12 + $0x90] sm:$0xff] }
 0x61c   :  { %1951 = vmatpush1.bf16.msra.mxu1 %v2988_v52  ;;  %1911 = vmatprep.subr.bf16.mxu0 %v2995_v53  ;;  %v1501_v52 = vld [vmem:[#allocation12 + $0xb0] sm:$0xff]  ;;  %v1498_v53 = vld [vmem:[#allocation12 + $0x98] sm:$0xff] }
 0x61d   :  { %1952 = vmatprep.subr.bf16.mxu1 %v2997_v55 }
 0x6e5   :  { %v3215_v4 = vpop.f32.mrb[12].mxu0 }
 0x6e6   :  { %v3237_v59 = vpop.f32.mrb[12].mxu1  ;;  %v3216_v6 = vpop.f32.mrb[13].mxu0 }
 0x6e7   :  { %v3217_v60 = vadd.f32 %v3216_v6, %v3215_v4  ;;  %v3238_v21 = vpop.f32.mrb[13].mxu1  ;;  %v3218_v26 = vpop.f32.mrb[14].mxu0  ;;  %v1516_v4 = vld [vmem:[#allocation12 + $0x128] sm:$0xff]  ;;  %v2996_v6 = vcombine.low %v1504_v49, %v1508_v50 }
 0x6e8   :  { %v3239_v61 = vadd.f32 %v3238_v21, %v3237_v59  ;;  %v3240_v62 = vpop.f32.mrb[14].mxu1  ;;  %v3219_v63 = vpop.f32.mrb[15].mxu0  ;;  %v2994_v59 = vcombine.low %v1503_v47, %v1507_v48  ;;  %v3005_v21 = vcombine.high %v1512_v58, %v1516_v4  ;;  %v1490_v47 = vld [vmem:[#allocation12 + $0x58] sm:$0xff] }
 0x6e9   :  { %v3220_v0 = vadd.f32 %v3219_v63, %v3218_v26  ;;  %v3241_v1 = vpop.f32.mrb[15].mxu1  ;;  %v1519_v26 = vld [vmem:[#allocation12 + $0x140] sm:$0xff]  ;;  %v1524_v63 = vld [vmem:[#allocation12 + $0x168] sm:$0xff]  ;;  %1953 = vmatpush1.bf16.msra.mxu1 %v2996_v6  ;;  %v1494_v48 = vld [vmem:[#allocation12 + $0x78] sm:$0xff] }
 0x6ea   :  { %v1442_v2 = vadd.f32 %v3239_v61, %v3217_v60  ;;  %v3242_v3 = vadd.f32 %v3241_v1, %v3240_v62  ;;  %v3003_v60 = vcombine.high %v1511_v56, %v1515_v57  ;;  %v1523_v61 = vld [vmem:[#allocation12 + $0x160] sm:$0xff]  ;;  %v1520_v62 = vld [vmem:[#allocation12 + $0x148] sm:$0xff]  ;;  %1912 = vmatpush1.bf16.msra.mxu0 %v2994_v59  ;;  %v3004_v1 = vcombine.low %v1512_v58, %v1516_v4  ;;  %v1505_v4 = vld [vmem:[#allocation12 + $0xd0] sm:$0xff] }
 0x6eb   :  { %1954 = vmatprep.subr.bf16.mxu1 %v3005_v21  ;;  %v1509_v59 = vld [vmem:[#allocation12 + $0xf0] sm:$0xff]  ;;  %v1506_v6 = vld [vmem:[#allocation12 + $0xd8] sm:$0xff]  ;;  %v2990_v21 = vcombine.low %v1497_v51, %v1501_v52 }
 0x6ec   :  { %v1448_v5 = vsel %vm1089_vm12, %v1442_v2, 0.0  ;;  %v1445_v7 = vadd.f32 %v3242_v3, %v3220_v0  ;;  %v3002_v0 = vcombine.low %v1511_v56, %v1515_v57  ;;  %1913 = vmatprep.subr.bf16.mxu0 %v3003_v60  ;;  %v3011_v2 = vcombine.high %v1519_v26, %v1523_v61  ;;  %v1510_v60 = vld [vmem:[#allocation12 + $0xf8] sm:$0xff] }
 0x6ed   :  { %v1449_v8 = vrot.slane %v1448_v5, 4  ;;  %v3013_v3 = vcombine.high %v1520_v62, %v1524_v63  ;;  %1955 = vmatpush1.bf16.msra.mxu1 %v3004_v1  ;;  %v2984_v56 = vcombine.low %v1490_v47, %v1494_v48  ;;  %v2991_v57 = vcombine.high %v1497_v51, %v1501_v52  ;;  %v1514_v1 = vld [vmem:[#allocation12 + $0x118] sm:$0xff]  ;;  %v3456_v51 = vld [vmem:[#allocation13 + $0x90] sm:$0xff]  }
 0x6ee   :  { %v1455_v9 = vsel %vm1089_vm12, %v1445_v7, 0.0  ;;  %v1531_v7 = vld [vmem:[#allocation12 + $0x1a0] sm:$0xff]  ;;  %1914 = vmatpush1.bf16.msra.mxu0 %v3002_v0  ;;  %v1517_v0 = vld [vmem:[#allocation12 + $0x130] sm:$0xff]  ;;  %v3457_v52 = vld [vmem:[#allocation13 + $0x58] sm:$0xff]  }
 0x6ef   :  { %v1450_v10 = vadd.f32 %v1449_v8, %v1448_v5  ;;  %v1456_v11 = vrot.slane %v1455_v9, 4  ;;  %v1527_v5 = vld [vmem:[#allocation12 + $0x180] sm:$0xff]  ;;  %v1528_v8 = vld [vmem:[#allocation12 + $0x188] sm:$0xff]  ;;  %1915 = vmatprep.subr.bf16.mxu0 %v3011_v2  ;;  %1956 = vmatprep.subr.bf16.mxu1 %v3013_v3  ;;  %v1518_v2 = vld [vmem:[#allocation12 + $0x138] sm:$0xff]  ;;  %v2998_v3 = vcombine.low %v1505_v4, %v1509_v59 }
 0x6f0   :  { %v3018_v14 = vcombine.low %v1527_v5, %v1531_v7 }
 0x6f1   :  { %v1451_v12 = vrot.slane %v1450_v10, 2  ;;  %v1457_v13 = vadd.f32 %v1456_v11, %v1455_v9  ;;  %v1532_v9 = vld [vmem:[#allocation12 + $0x1a8] sm:$0xff]  ;;  %v3012_v11 = vcombine.low %v1520_v62, %v1524_v63  ;;  %v3001_v62 = vcombine.high %v1506_v6, %v1510_v60  ;;  %v1513_v63 = vld [vmem:[#allocation12 + $0x110] sm:$0xff] }
 0x6f2   :  { %v3020_v15 = vcombine.low %v1528_v8, %v1532_v9 }
 0x6f3   :  { %v1458_v25 = vrot.slane %v1457_v13, 2  ;;  %v1452_v27 = vadd.f32 %v1451_v12, %v1450_v10  ;;  %v3010_v10 = vcombine.low %v1519_v26, %v1523_v61  ;;  %v3019_v12 = vcombine.high %v1527_v5, %v1531_v7  ;;  %1957 = vmatpush1.bf16.msra.mxu1 %v3012_v11  ;;  %v1522_v11 = vld [vmem:[#allocation12 + $0x158] sm:$0xff] }
 0x6f4   :  { %v2999_v61 = vcombine.high %v1505_v4, %v1509_v59  ;;  %v3000_v5 = vcombine.low %v1506_v6, %v1510_v60  ;;  %v3007_v7 = vcombine.high %v1513_v63, %v1517_v0  ;;  %v3465_v4 = vld [vmem:[#allocation13 + $0x68] sm:$0xff]  }
 0x6f5   :  { %v1453_v41 = vrot.slane %v1452_v27, 1  ;;  %v1459_v42 = vadd.f32 %v1458_v25, %v1457_v13  ;;  %v3021_v13 = vcombine.high %v1528_v8, %v1532_v9  ;;  %1916 = vmatpush1.bf16.msra.mxu0 %v3010_v10  ;;  %v3028_v25 = vcombine.low %v1536_v18, %v1540_v20  ;;  %v1521_v9 = vld [vmem:[#allocation12 + $0x150] sm:$0xff]  ;;  %v3466_v59 = vld [vmem:[#allocation13 + $0xe8] sm:$0xff]  }
 0x6f6   :  { %1917 = vmatprep.subr.bf16.mxu0 %v3019_v12  ;;  %v3009_v8 = vcombine.high %v1514_v1, %v1518_v2  ;;  %v1525_v10 = vld [vmem:[#allocation12 + $0x170] sm:$0xff]  ;;  %v1526_v12 = vld [vmem:[#allocation12 + $0x178] sm:$0xff]  ;;  %v3467_v6 = vld [vmem:[#allocation13 + $0x28] sm:$0xff]  }
 0x6f7   :  { %v1460_v35 = vrot.slane %v1459_v42, 1  ;;  %v1454_v22 = vadd.f32 %v1453_v41, %v1452_v27  ;;  %1958 = vmatprep.subr.bf16.mxu1 %v3021_v13  ;;  %v3029_v27 = vcombine.high %v1536_v18, %v1540_v20  ;;  %v3006_v13 = vcombine.low %v1513_v63, %v1517_v0  ;;  %v1533_v18 = vld [vmem:[#allocation12 + $0x1b0] sm:$0xff]  ;;  %v1534_v20 = vld [vmem:[#allocation12 + $0x1b8] sm:$0xff]  ;;  %v3468_v60 = vld [vmem:[#allocation13 + $0xa8] sm:$0xff]  }
 0x6f8   :  { %1959 = vmatpush1.bf16.msra.mxu1 %v3020_v15  ;;  %v3015_v15 = vcombine.high %v1521_v9, %v1525_v10  ;;  %v3017_v16 = vcombine.high %v1522_v11, %v1526_v12  ;;  %v3022_v33 = vcombine.low %v1529_v17, %v1533_v18  ;;  %v3473_v63 = vld [vmem:[#allocation13 + $0x78] sm:$0xff]  }
 0x6f9   :  { %v1461_v24 = vadd.f32 %v1460_v35, %v1459_v42  ;;  %1918 = vmatpush1.bf16.msra.mxu0 %v3018_v14  ;;  %1960 = vmatprep.subr.bf16.mxu1 %v3029_v27  ;;  %v1489_v35 = vld [vmem:[#allocation12 + $0x50] sm:$0xff]  ;;  %v3008_v14 = vcombine.low %v1514_v1, %v1518_v2  ;;  %v3023_v27 = vcombine.high %v1529_v17, %v1533_v18  ;;  %v3474_v0 = vld [vmem:[#allocation13 + $0xf8] sm:$0xff]  }
 0x6fa   :  { %1919 = vmatprep.subr.bf16.mxu0 %v3027_v19  ;;  %v2982_v55 = vcombine.low %v1489_v35, %v1493_v46  ;;  %v1530_v19 = vld [vmem:[#allocation12 + $0x198] sm:$0xff] }
 0x6fb   :  { %v3962_v54 = vsel %vm554_vm3, %v1454_v22, %v1461_v24  ;;  %v2983_v22 = vcombine.high %v1489_v35, %v1493_v46  ;;  %v2985_v24 = vcombine.high %v1490_v47, %v1494_v48  ;;  %v3025_v28 = vcombine.high %v1530_v19, %v1534_v20  ;;  %v3449_v35 = vld [vmem:[#allocation13 + $0x48] sm:$0xff]   ;;  %v3475_v1 = vld [vmem:[#allocation13 + $0x38] sm:$0xff]  }
 0x6fc   :  { %1463 = vrot.lane.b32.xlu1 %v3962_v54, %s3687_s30  ;;  %1961 = vmatpush1.bf16.msra.mxu1 %v3028_v25  ;;  %v3016_v25 = vcombine.low %v1522_v11, %v1526_v12  ;;  %v3450_v46 = vld [vmem:[#allocation13 + $0xc8] sm:$0xff]   ;;  %v3476_v2 = vld [vmem:[#allocation13 + $0xb8] sm:$0xff]   ;;  %v1559_v12 = vsub.s32 3, %v3905_v34 }
 0x6fd   :  { %1920 = vmatpush1.bf16.msra.mxu0 %v3026_v23  ;;  %2028 = vmatprep.subr.bf16.mxu1 %v2977_v38  ;;  %v3014_v23 = vcombine.low %v1521_v9, %v1525_v10  ;;  %v3451_v47 = vld [vmem:[#allocation13 + $0x8] sm:$0xff]   ;;  %v1551_v9 = vsub.s32 1, %v3905_v34  ;;  %v3693_v10 = vmov 1983009808  }
 0x6fe   :  { %1987 = vmatprep.subr.bf16.mxu0 %v2975_v32  ;;  %v1542_v32 = vld [vmem:[#allocation12 + $0x1f8] sm:$0xff]  ;;  %v3452_v48 = vld [vmem:[#allocation13 + $0x88] sm:$0xff]   ;;  %v2080_v11 = vunpack.c.l.s4 %v3693_v10 }
 0x6ff   :  { %v3505_v10 = vld [vmem:[#allocation13 + $0x178] sm:$0xff]  }
 0x76e   :  { %v1464_v39 = vpop.permute.xlu1 %1463 }
 0x76f   :  { %v1465_v41 = vadd.f32 %v1464_v39, %v3962_v54  ;;  %v1502_v54 = vld [vmem:[#allocation12 + $0xb8] sm:$0xff]  ;;  %v3030_v39 = vcombine.low %v1537_v29, %v1541_v30 }
 0x770   :  { %v2993_v58 = vcombine.high %v1498_v53, %v1502_v54  ;;  %v2992_v26 = vcombine.low %v1498_v53, %v1502_v54  ;;  %v3458_v53 = vld [vmem:[#allocation13 + $0xd8] sm:$0xff]  }
 0x771   :  { %1466 = vrot.lane.b32.xlu0 %v1465_v41, %s3678_s23  ;;  %v3459_v54 = vld [vmem:[#allocation13 + $0x18] sm:$0xff]  }
 0x7e3   :  { %v1467_v42 = vpop.permute.xlu0 %1466 }
 0x7e4   :  { %v1468_v43 = vadd.f32 %v1467_v42, %v1465_v41  ;;  %v3445_v42 = vld [vmem:[#allocation13 + $0x40] sm:$0xff]  }
 0x7e6   :  { %v1469_v45 = vmul.f32 0.25, %v1468_v43  ;;  %v3446_v43 = vld [vmem:[#allocation13 + $0xc0] sm:$0xff]  }
 0x7e8   :  { %v1477_v49 = vadd.f32 %v2969_v44, %v1469_v45  ;;  %v3447_v44 = vld [vmem:[#allocation13] sm:$0xff]  }
 0x7e9   :  { %v3448_v45 = vld [vmem:[#allocation13 + $0x80] sm:$0xff]  }
 0x7ea   :  { %v3971_v50 = vpack.c.bf16 %v1477_v49, %v1477_v49  ;;  %v3453_v49 = vld [vmem:[#allocation13 + $0x50] sm:$0xff]  }
 0x7ec   :  { %1938 = vmatmul.mubr.bf16.vlgmr.msra.gmra.mrb[16].mxu0 %v3971_v50  ;;  %1979 = vmatmul.mubr.bf16.vlgmr.msra.gmra.mrb[16].mxu1 %v3971_v50 }
 0x7ed   :  { %1988 = vmatpush1.bf16.msra.mxu0 %v2974_v31  ;;  %2029 = vmatpush1.bf16.msra.mxu1 %v2976_v37  ;;  %v1538_v31 = vld [vmem:[#allocation12 + $0x1d8] sm:$0xff]  ;;  %v3031_v37 = vcombine.high %v1537_v29, %v1541_v30 }
 0x7ee   :  { %1989 = vmatprep.subr.bf16.mxu0 %v2983_v22  ;;  %2030 = vmatprep.subr.bf16.mxu1 %v2985_v24  ;;  %v3033_v38 = vcombine.high %v1538_v31, %v1542_v32  ;;  %v3032_v41 = vcombine.low %v1538_v31, %v1542_v32  ;;  %v3454_v22 = vld [vmem:[#allocation13 + $0xd0] sm:$0xff]  }
 0x7ef   :  { %2019 = vmatprep.mubr.bf16.mxu0 %v3692_v36  ;;  %2060 = vmatprep.mubr.bf16.mxu1 %v3692_v36  ;;  %v3024_v36 = vcombine.low %v1530_v19, %v1534_v20  ;;  %v3455_v24 = vld [vmem:[#allocation13 + $0x10] sm:$0xff]  }
 0x7f1   :  { %1990 = vmatpush1.bf16.msra.mxu0 %v2982_v55  ;;  %2031 = vmatpush1.bf16.msra.mxu1 %v2984_v56  ;;  %v3461_v55 = vld [vmem:[#allocation13 + $0x60] sm:$0xff]  }
 0x7f2   :  { %1991 = vmatprep.subr.bf16.mxu0 %v2991_v57  ;;  %2032 = vmatprep.subr.bf16.mxu1 %v2993_v58  ;;  %v3462_v56 = vld [vmem:[#allocation13 + $0xe0] sm:$0xff]  }
 0x7f3   :  { %v3463_v57 = vld [vmem:[#allocation13 + $0x20] sm:$0xff]  }
 0x7f4   :  { %v3464_v58 = vld [vmem:[#allocation13 + $0xa0] sm:$0xff]  }
 0x7f5   :  { %1992 = vmatpush1.bf16.msra.mxu0 %v2990_v21  ;;  %2033 = vmatpush1.bf16.msra.mxu1 %v2992_v26  ;;  %v3469_v21 = vld [vmem:[#allocation13 + $0x70] sm:$0xff]  }
 0x7f6   :  { %1993 = vmatprep.subr.bf16.mxu0 %v2999_v61  ;;  %2034 = vmatprep.subr.bf16.mxu1 %v3001_v62  ;;  %v3470_v26 = vld [vmem:[#allocation13 + $0xf0] sm:$0xff]  }
 0x7f7   :  { %v3471_v61 = vld [vmem:[#allocation13 + $0x30] sm:$0xff]  }
 0x7f8   :  { %v3472_v62 = vld [vmem:[#allocation13 + $0xb0] sm:$0xff]  }
 0x7f9   :  { %1994 = vmatpush1.bf16.msra.mxu0 %v2998_v3  ;;  %2035 = vmatpush1.bf16.msra.mxu1 %v3000_v5  ;;  %v3477_v3 = vld [vmem:[#allocation13 + $0x140] sm:$0xff]  }
 0x7fa   :  { %1995 = vmatprep.subr.bf16.mxu0 %v3007_v7  ;;  %2036 = vmatprep.subr.bf16.mxu1 %v3009_v8  ;;  %v3478_v5 = vld [vmem:[#allocation13 + $0x1c0] sm:$0xff]   ;;  %v1555_v7 = vsub.s32 2, %v3905_v34  ;;  %v3981_v8 = vld [vmem:[%s4033_s10] sm:$0xff]  ;;  %s3694_s10 = smov [#allocation15]  }
 0x7fb   :  { %v1560_v17 = vrot.slane %v3981_v8, %v1559_v12  ;;  %s2809_s30 = sshll.u32 %s3694_s10, 4  ;;  %s2810_s30 = int_to_ptr.vmem [resolvable:$true] %s2809_s30 }
 0x7fc   :  { %s3645_s19 = scalar_lea.vmem %s2810_s30, 256  ;;  %p3650_p7 = scmp.lt.s32.totalorder %s2810_s30, %s2810_s30 }
 0x7fd   :  { %1996 = vmatpush1.bf16.msra.mxu0 %v3006_v13  ;;  %2037 = vmatpush1.bf16.msra.mxu1 %v3008_v14  ;;  %v1548_v13 = vrot.slane %v3981_v8, %v3915_v40  ;;  %v1556_v14 = vrot.slane %v3981_v8, %v1555_v7  ;;  %p3646_p6 = scmp.ne.s32.totalorder %s2810_s30, %s3645_s19  ;;  %p3651_p8 = scmp.lt.s32.totalorder %s3645_s19, %s3645_s19 }
 0x7fe   :  { %1997 = vmatprep.subr.bf16.mxu0 %v3015_v15  ;;  %2038 = vmatprep.subr.bf16.mxu1 %v3017_v16  ;;  %v1552_v15 = vrot.slane %v3981_v8, %v1551_v9  ;;  %v2081_v16 = vunpack.c.0.s8 %v2080_v11  ;;  %v3506_v11 = vld [vmem:[#allocation13 + $0x1f8] sm:$0xff]  }
 0x7ff   :  { %p3652_p9 = por %p3651_p8, %p3650_p7 }
 0x800   :  { %v3991_v29 = vsub.s32 %v2081_v16, %v3905_v34 }
 0x801   :  { %1998 = vmatpush1.bf16.msra.mxu0 %v3014_v23  ;;  %2039 = vmatpush1.bf16.msra.mxu1 %v3016_v25  ;;  %p3653_p10 = pnand %p3652_p9, %p3646_p6 }
 0x802   :  { %1999 = vmatprep.subr.bf16.mxu0 %v3023_v27  ;;  %2040 = vmatprep.subr.bf16.mxu1 %v3025_v28 }
 0x805   :  { %2000 = vmatpush1.bf16.msra.mxu0 %v3022_v33  ;;  %2041 = vmatpush1.bf16.msra.mxu1 %v3024_v36 }
 0x806   :  { %2001 = vmatprep.subr.bf16.mxu0 %v3031_v37  ;;  %2042 = vmatprep.subr.bf16.mxu1 %v3033_v38 }
 0x809   :  { %2002 = vmatpush1.bf16.msra.mxu0 %v3030_v39  ;;  %2043 = vmatpush1.bf16.msra.mxu1 %v3032_v41  ;;  %v3479_v41 = vld [vmem:[#allocation13 + $0x100] sm:$0xff]  }
 0x80a   :  { %3243 = vmatprep.subr.bf16.mxu0 %v3445_v42  ;;  %3265 = vmatprep.subr.bf16.mxu1 %v3446_v43  ;;  %v3480_v42 = vld [vmem:[#allocation13 + $0x180] sm:$0xff]  }
 0x80c   :  { %2020 = vmatmul.mubr.bf16.vlgmr.msra.gmra.mrb[20].mxu0 %v3971_v50  ;;  %2061 = vmatmul.mubr.bf16.vlgmr.msra.gmra.mrb[20].mxu1 %v3971_v50  ;;  %v3460_v50 = vld [vmem:[#allocation13 + $0x98] sm:$0xff]  }
 0x80d   :  { %3244 = vmatpush3.bf16.msra.mxu0 %v3447_v44  ;;  %3266 = vmatpush3.bf16.msra.mxu1 %v3448_v45  ;;  %v3481_v45 = vld [vmem:[#allocation13 + $0x148] sm:$0xff]  }
 0x80e   :  { %3245 = vmatprep.subr.bf16.mxu0 %v3449_v35  ;;  %3267 = vmatprep.subr.bf16.mxu1 %v3450_v46  ;;  %v3482_v35 = vld [vmem:[#allocation13 + $0x1c8] sm:$0xff]  }
 0x811   :  { %3246 = vmatpush3.bf16.msra.mxu0 %v3451_v47  ;;  %3268 = vmatpush3.bf16.msra.mxu1 %v3452_v48  ;;  %v3483_v48 = vld [vmem:[#allocation13 + $0x108] sm:$0xff]  }
 0x812   :  { %3247 = vmatprep.subr.bf16.mxu0 %v3453_v49  ;;  %3269 = vmatprep.subr.bf16.mxu1 %v3454_v22  ;;  %v3484_v49 = vld [vmem:[#allocation13 + $0x188] sm:$0xff]  }
 0x815   :  { %3248 = vmatpush3.bf16.msra.mxu0 %v3455_v24  ;;  %3270 = vmatpush3.bf16.msra.mxu1 %v3456_v51  ;;  %v3485_v24 = vld [vmem:[#allocation13 + $0x150] sm:$0xff]  }
 0x816   :  { %3249 = vmatprep.subr.bf16.mxu0 %v3457_v52  ;;  %3271 = vmatprep.subr.bf16.mxu1 %v3458_v53  ;;  %v3486_v51 = vld [vmem:[#allocation13 + $0x1d0] sm:$0xff]  }
 0x817   :  { %v3487_v52 = vld [vmem:[#allocation13 + $0x110] sm:$0xff]  }
 0x818   :  { %v3488_v53 = vld [vmem:[#allocation13 + $0x190] sm:$0xff]  }
 0x819   :  { %3250 = vmatpush3.bf16.msra.mxu0 %v3459_v54  ;;  %3272 = vmatpush3.bf16.msra.mxu1 %v3460_v50  ;;  %v3489_v54 = vld [vmem:[#allocation13 + $0x158] sm:$0xff]  }
 0x81a   :  { %3251 = vmatprep.subr.bf16.mxu0 %v3461_v55  ;;  %3273 = vmatprep.subr.bf16.mxu1 %v3462_v56  ;;  %v3490_v50 = vld [vmem:[#allocation13 + $0x1d8] sm:$0xff]  }
 0x81b   :  { %v3491_v55 = vld [vmem:[#allocation13 + $0x118] sm:$0xff]  }
 0x81c   :  { %v3492_v56 = vld [vmem:[#allocation13 + $0x198] sm:$0xff]  }
 0x81d   :  { %3252 = vmatpush3.bf16.msra.mxu0 %v3463_v57  ;;  %3274 = vmatpush3.bf16.msra.mxu1 %v3464_v58  ;;  %v3493_v57 = vld [vmem:[#allocation13 + $0x160] sm:$0xff]  }
 0x81e   :  { %3253 = vmatprep.subr.bf16.mxu0 %v3465_v4  ;;  %3275 = vmatprep.subr.bf16.mxu1 %v3466_v59  ;;  %v3494_v58 = vld [vmem:[#allocation13 + $0x1e0] sm:$0xff]  }
 0x81f   :  { %v3495_v4 = vld [vmem:[#allocation13 + $0x120] sm:$0xff]  }
 0x820   :  { %v3496_v59 = vld [vmem:[#allocation13 + $0x1a0] sm:$0xff]  }
 0x821   :  { %3254 = vmatpush3.bf16.msra.mxu0 %v3467_v6  ;;  %3276 = vmatpush3.bf16.msra.mxu1 %v3468_v60  ;;  %v3497_v6 = vld [vmem:[#allocation13 + $0x168] sm:$0xff]  }
 0x822   :  { %3255 = vmatprep.subr.bf16.mxu0 %v3469_v21  ;;  %3277 = vmatprep.subr.bf16.mxu1 %v3470_v26  ;;  %v3498_v60 = vld [vmem:[#allocation13 + $0x1e8] sm:$0xff]  }
 0x823   :  { %v3499_v21 = vld [vmem:[#allocation13 + $0x128] sm:$0xff]  }
 0x824   :  { %v3500_v26 = vld [vmem:[#allocation13 + $0x1a8] sm:$0xff]  }
 0x825   :  { %3256 = vmatpush3.bf16.msra.mxu0 %v3471_v61  ;;  %3278 = vmatpush3.bf16.msra.mxu1 %v3472_v62  ;;  %v3501_v61 = vld [vmem:[#allocation13 + $0x170] sm:$0xff]  }
 0x826   :  { %3257 = vmatprep.subr.bf16.mxu0 %v3473_v63  ;;  %3279 = vmatprep.subr.bf16.mxu1 %v3474_v0  ;;  %v3502_v62 = vld [vmem:[#allocation13 + $0x1f0] sm:$0xff]   ;;  %v1563_v63 = vsub.s32 4, %v3905_v34  ;;  %v1571_v0 = vsub.s32 6, %v3905_v34 }
 0x828   :  { %v1564_v7 = vrot.slane %v3981_v8, %v1563_v63  ;;  %v1572_v9 = vrot.slane %v3981_v8, %v1571_v0 }
 0x829   :  { %3258 = vmatpush3.bf16.msra.mxu0 %v3475_v1  ;;  %3280 = vmatpush3.bf16.msra.mxu1 %v3476_v2  ;;  %v1567_v1 = vsub.s32 5, %v3905_v34  ;;  %v1575_v2 = vsub.s32 7, %v3905_v34  ;;  %v3507_v34 = vld [vmem:[#allocation13 + $0x138] sm:$0xff]  }
 0x82a   :  { %3287 = vmatprep.subr.bf16.mxu0 %v3477_v3  ;;  %3309 = vmatprep.subr.bf16.mxu1 %v3478_v5  ;;  %v3503_v3 = vld [vmem:[#allocation13 + $0x130] sm:$0xff]  }
 0x82b   :  { %v3504_v5 = vld [vmem:[#allocation13 + $0x1b0] sm:$0xff]   ;;  %v1568_v12 = vrot.slane %v3981_v8, %v1567_v1 }
 0x8bf   :  { %v1939_v18 = vpop.f32.mrb[16].mxu0  ;;  %v1980_v19 = vpop.f32.mrb[16].mxu1 }
 0x8c0   :  { %v1940_v20 = vadd.f32 %v1939_v18, %v1548_v13  ;;  %v1981_v23 = vadd.f32 %v1980_v19, %v1556_v14  ;;  %v1941_v25 = vpop.f32.mrb[17].mxu0  ;;  %v1982_v27 = vpop.f32.mrb[17].mxu1  ;;  %v1576_v13 = vrot.slane %v3981_v8, %v1575_v2 }
 0x8c1   :  { %v1942_v28 = vadd.f32 %v1941_v25, %v1552_v15  ;;  %v1983_v30 = vadd.f32 %v1982_v27, %v1560_v17  ;;  %v1943_v31 = vpop.f32.mrb[18].mxu0  ;;  %v1984_v40 = vpop.f32.mrb[18].mxu1 }
 0x8c2   :  { %v1944_v32 = vpop.f32.mrb[19].mxu0  ;;  %v1985_v33 = vpop.f32.mrb[19].mxu1  ;;  %v2115_v43 = vpack.c.bf16 %v1940_v20, %v1940_v20  ;;  %v2117_v44 = vpack.c.bf16 %v1981_v23, %v1981_v23 }
 0x8c3   :  { %v2077_v36 = vcombine.low %v1940_v20, %v1942_v28  ;;  %v2116_v37 = vpack.c.bf16 %v1942_v28, %v1942_v28  ;;  %v2078_v38 = vcombine.low %v1981_v23, %v1983_v30  ;;  %v2118_v39 = vpack.c.bf16 %v1983_v30, %v1983_v30  ;;  %v3508_v20 = vld [vmem:[#allocation13 + $0x1b8] sm:$0xff]  }
 0x8c5   :  { %v2085_v46 = vrot.slane %v2077_v36, %v3991_v29  ;;  %v2092_v47 = vrot.slane %v2078_v38, %v3991_v29  ;;  %2674 = vmatprep.mubr.bf16.mxu0 %v2116_v37  ;;  %2714 = vmatprep.mubr.bf16.mxu1 %v2118_v39 }
 0x8c6   :  { %2675 = vmatmul.mubr.bf16.vlgmr.msra.gmra.mrb[24].mxu0 %v2115_v43  ;;  %2715 = vmatmul.mubr.bf16.vlgmr.msra.gmra.mrb[24].mxu1 %v2117_v44 }
 0x8c7   :  { %3288 = vmatpush3.bf16.msra.mxu0 %v3479_v41  ;;  %3310 = vmatpush3.bf16.msra.mxu1 %v3480_v42  ;;  %v2093_v22 = vcombine.low %v2085_v46, %v2092_v47 }
 0x8c8   :  { %3289 = vmatprep.subr.bf16.mxu0 %v3481_v45  ;;  %3311 = vmatprep.subr.bf16.mxu1 %v3482_v35 }
 0x8c9   :  { %2113 = vst [vmem:[#allocation15] sm:$0xff] %v2093_v22 }
 0x8cb   :  { %3290 = vmatpush3.bf16.msra.mxu0 %v3483_v48  ;;  %3312 = vmatpush3.bf16.msra.mxu1 %v3484_v49 }
 0x8cc   :  { %3291 = vmatprep.subr.bf16.mxu0 %v3485_v24  ;;  %3313 = vmatprep.subr.bf16.mxu1 %v3486_v51 }
 0x8cf   :  { %3292 = vmatpush3.bf16.msra.mxu0 %v3487_v52  ;;  %3314 = vmatpush3.bf16.msra.mxu1 %v3488_v53 }
 0x8d0   :  { %3293 = vmatprep.subr.bf16.mxu0 %v3489_v54  ;;  %3315 = vmatprep.subr.bf16.mxu1 %v3490_v50 }
 0x8d3   :  { %3294 = vmatpush3.bf16.msra.mxu0 %v3491_v55  ;;  %3316 = vmatpush3.bf16.msra.mxu1 %v3492_v56 }
 0x8d4   :  { %3295 = vmatprep.subr.bf16.mxu0 %v3493_v57  ;;  %3317 = vmatprep.subr.bf16.mxu1 %v3494_v58 }
 0x8d7   :  { %3296 = vmatpush3.bf16.msra.mxu0 %v3495_v4  ;;  %3318 = vmatpush3.bf16.msra.mxu1 %v3496_v59 }
 0x8d8   :  { %3297 = vmatprep.subr.bf16.mxu0 %v3497_v6  ;;  %3319 = vmatprep.subr.bf16.mxu1 %v3498_v60 }
 0x8db   :  { %3298 = vmatpush3.bf16.msra.mxu0 %v3499_v21  ;;  %3320 = vmatpush3.bf16.msra.mxu1 %v3500_v26 }
 0x8dc   :  { %3299 = vmatprep.subr.bf16.mxu0 %v3501_v61  ;;  %3321 = vmatprep.subr.bf16.mxu1 %v3502_v62 }
 0x8df   :  { %v2021_v14 = vpop.f32.mrb[20].mxu0  ;;  %v2062_v15 = vpop.f32.mrb[20].mxu1  ;;  %3300 = vmatpush3.bf16.msra.mxu0 %v3503_v3  ;;  %3322 = vmatpush3.bf16.msra.mxu1 %v3504_v5 }
 0x8e0   :  { %v2022_v16 = vadd.f32 %v2021_v14, %v1564_v7  ;;  %v2063_v17 = vadd.f32 %v2062_v15, %v1572_v9  ;;  %v2023_v18 = vpop.f32.mrb[21].mxu0  ;;  %v2064_v19 = vpop.f32.mrb[21].mxu1  ;;  %3301 = vmatprep.subr.bf16.mxu0 %v3505_v10  ;;  %3323 = vmatprep.subr.bf16.mxu1 %v3506_v11 }
 0x8e1   :  { %v2024_v23 = vadd.f32 %v2023_v18, %v1568_v12  ;;  %v2065_v25 = vadd.f32 %v2064_v19, %v1576_v13  ;;  %v2025_v27 = vpop.f32.mrb[22].mxu0  ;;  %v2066_v28 = vpop.f32.mrb[22].mxu1 }
 0x8e2   :  { %v2026_v30 = vpop.f32.mrb[23].mxu0  ;;  %v2067_v31 = vpop.f32.mrb[23].mxu1  ;;  %v2119_v36 = vpack.c.bf16 %v2022_v16, %v2022_v16  ;;  %v2121_v37 = vpack.c.bf16 %v2063_v17, %v2063_v17 }
 0x8e3   :  { %v2094_v40 = vcombine.low %v2022_v16, %v2024_v23  ;;  %v2120_v8 = vpack.c.bf16 %v2024_v23, %v2024_v23  ;;  %v2095_v32 = vcombine.low %v2063_v17, %v2065_v25  ;;  %v2122_v33 = vpack.c.bf16 %v2065_v25, %v2065_v25  ;;  %3302 = vmatpush3.bf16.msra.mxu0 %v3507_v34 }
 0x8e4   :  { %3324 = vmatpush3.bf16.msra.mxu1 %v3508_v20 }
 0x8e5   :  { %v2102_v38 = vrot.slane %v2094_v40, %v3991_v29  ;;  %v2109_v39 = vrot.slane %v2095_v32, %v3991_v29  ;;  %2754 = vmatprep.mubr.bf16.mxu0 %v2120_v8  ;;  %2794 = vmatprep.mubr.bf16.mxu1 %v2122_v33 }
 0x8e6   :  { %2755 = vmatmul.mubr.bf16.vlgmr.msra.gmra.mrb[28].mxu0 %v2119_v36 }
 0x8e7   :  { %2795 = vmatmul.mubr.bf16.vlgmr.msra.gmra.mrb[28].mxu1 %v2121_v37  ;;  %v2110_v41 = vcombine.low %v2102_v38, %v2109_v39 }
 0x8e9   :  { %2114 = vst [vmem:[#allocation15 + $0x8] sm:$0xff] %v2110_v41 }
 0x8ea   :  { %3656 = shalt.err (!%p3653_p10)
}
 0x8eb   :  { %s3657_s15 = scalar_lea.hbm %s4036_s13, 256 }
 0x8ec   :  { %p3658_p11 = scmp.ne.s32.totalorder %s4036_s13, %s3657_s15  ;;  %p3661_p12 = scmp.lt.u32.totalorder %s3657_s15, %s4036_s13 }
 0x8ee   :  { %p3663_p13 = pnand %p3661_p12, %p3658_p11 }
 0x8f0   :  { %3666 = shalt.err (!%p3663_p13)
}
 0x8f1   :  { %2812 = dma.vmem_to_hbm [thread:$0]  %s2810_s30, 256, %s4036_s13, [#allocation6]   ;;  %v3034_v43 = vld [vmem:[%s4035_s12] ss:$0 sm:$0xff] }
 0x999   :  { %v3259_v29 = vpop.f32.mrb[24].mxu0  ;;  %v3281_v42 = vpop.f32.mrb[24].mxu1 }
 0x99a   :  { %v3260_v44 = vpop.f32.mrb[25].mxu0  ;;  %v3282_v45 = vpop.f32.mrb[25].mxu1 }
 0x99b   :  { %v3261_v35 = vadd.f32 %v3260_v44, %v3259_v29  ;;  %v3283_v46 = vadd.f32 %v3282_v45, %v3281_v42  ;;  %v3262_v47 = vpop.f32.mrb[26].mxu0  ;;  %v3284_v48 = vpop.f32.mrb[26].mxu1 }
 0x99c   :  { %v3263_v49 = vpop.f32.mrb[27].mxu0  ;;  %v3285_v22 = vpop.f32.mrb[27].mxu1 }
 0x99d   :  { %v2677_v24 = vadd.f32 %v3261_v35, %v3034_v43 }
 0x99f   :  { %v2717_v51 = vadd.f32 %v3283_v46, %v2677_v24 }
 0x9b9   :  { %v3303_v52 = vpop.f32.mrb[28].mxu0 }
 0x9ba   :  { %v3325_v53 = vpop.f32.mrb[28].mxu1  ;;  %v3304_v54 = vpop.f32.mrb[29].mxu0 }
 0x9bb   :  { %v3305_v50 = vadd.f32 %v3304_v54, %v3303_v52  ;;  %v3326_v55 = vpop.f32.mrb[29].mxu1  ;;  %v3306_v56 = vpop.f32.mrb[30].mxu0 }
 0x9bc   :  { %v3327_v57 = vadd.f32 %v3326_v55, %v3325_v53  ;;  %v3328_v58 = vpop.f32.mrb[30].mxu1  ;;  %v3307_v4 = vpop.f32.mrb[31].mxu0 }
 0x9bd   :  { %v2757_v59 = vadd.f32 %v3305_v50, %v2717_v51  ;;  %v3329_v6 = vpop.f32.mrb[31].mxu1 }
 0x9bf   :  { %v2797_v60 = vadd.f32 %v3327_v57, %v2757_v59 }
 0x9c1   :  { %2802 = vst [vmem:[%s4037_s14] sm:$0x3] %v2797_v60 }
 0x9c2   :  { %3675 = dma.done.wait [#allocation6], 256  }
 0x9c3   :  { %3676 = vsyncadd [#allocation6], 4294967040 }
 0x9c4   :  { %2820 = vsyncpa [#allocation5], 1 }
 0x9c5   :  { %2821 = vsyncpa [#allocation8], 1 }
 0x9c6   :  { %2822 = vsyncpa [#allocation11], 1 }
 0x9c7   :  { %2823 = vsyncpa [#allocation14], 1 }
 0x9c8   :  { %2824 = vsyncpa [#allocation6], 1 }

</bundles_post_ra>
